<compile_context>
chip_gen: v7x
topology: tpu7x:2x2x1
jax: 0.10.0
libtpu: 0.0.40
codegen_flags: <defaults>
</compile_context>

<pallas_src>
import math

import jax
import jax.numpy as jnp
from jax.experimental import pallas as pl
from jax.experimental.pallas import tpu as pltpu

# Hard-coded bounding box from STNBlock.forward.
_X1, _Y1, _X2, _Y2 = 79, 154, 2045, 199


def _next_pow2(n: int) -> int:
    # clamp_to_nearest_power_of_2 for positive ints: 2 ** ceil(log2(n))
    assert n > 0
    return 1 << (n - 1).bit_length()


def _stn_theta_consts(h: int, w: int):
    y1 = h - _Y1
    y2 = h - _Y2
    extentx = _next_pow2(abs(_X1 - _X2))      # = 2048
    extenty = _next_pow2(abs(y1 - y2))        # = next_pow2(45) = 64
    t00 = extentx / w
    t11 = extenty / h
    t02 = (_X2 + _X1) / w - 1.0
    t12 = (y2 + y1) / h - 1.0
    return extentx, extenty, t00, t11, t02, t12


def _interp_matrix(scale, offset, out_size, in_size):
    """(in_size, out_size) bilinear sampling matrix for one axis.

    Column j holds the (<=2) bilinear weights for sampling the input axis at
    normalized coordinate scale*linspace(-1,1,out_size)[j] + offset
    (align_corners=True; out-of-range taps contribute 0 == zeros padding).
    """
    lin = jnp.linspace(-1.0, 1.0, out_size, dtype=jnp.float32)
    g = scale * lin + offset                          # normalized coord
    p = (g + 1.0) * 0.5 * (in_size - 1)               # pixel coord
    p0 = jnp.floor(p)
    w1 = p - p0
    w0 = 1.0 - w1
    p0i = p0.astype(jnp.int32)
    p1i = p0i + 1
    rows = jnp.arange(in_size, dtype=jnp.int32)[:, None]
    m = (jnp.where(rows == p0i[None, :], w0[None, :], 0.0)
         + jnp.where(rows == p1i[None, :], w1[None, :], 0.0))
    return m.astype(jnp.float32)


def _tap_band(scale, offset, out_size, in_size):
    """Input-index band [lo, hi) touched by any bilinear tap (trace-time Python)."""
    gs = (-abs(scale) + offset, abs(scale) + offset)
    ps = [(g + 1.0) * 0.5 * (in_size - 1) for g in gs]
    lo = int(math.floor(min(ps)))
    hi = int(math.floor(max(ps))) + 2                 # include the p0+1 tap (excl. end)
    lo = max(lo, 0)
    hi = min(hi, in_size)
    if hi <= lo:                                      # fully out of range -> keep full
        return 0, in_size
    return lo, hi


def _covering_block(lo, hi, dim, align):
    """Smallest `align`-multiple block size (and block index) such that a single
    aligned block covers [lo, hi) without leaving [0, dim)."""
    bs = ((hi - lo + align - 1) // align) * align
    while bs < dim:
        start = (lo // bs) * bs
        if start + bs >= hi and start + bs <= dim:
            return bs, start // bs
        bs += align
    return dim, 0


def _pick_plane_batch(n_planes, max_p=4):
    # Fill the MXU M dim with several planes per step, but keep >=2 plane-group
    # grid steps (v7x has 2 TensorCores) whenever there is more than one plane.
    for p in range(max_p, 1, -1):
        if n_planes % p == 0 and n_planes // p >= 2:
            return p
    return 1


def _stn_sample_kernel(x_ref, ry_ref, cx_ref, o_ref):
    # x_ref : (P, HB, W)      row-band of P input planes, original dtype
    # ry_ref: (H_out, HB)     row-interp matrix band (bf16 or f32), shared
    # cx_ref: (W, TW)         column-interp matrix block (bf16 or f32), resident
    # o_ref : (P, H_out, TW)  lane-dense output block
    n_p, h_out, tw = o_ref.shape
    cdt = ry_ref.dtype
    ry = ry_ref[...]
    rows = []
    for p in range(n_p):                              # small dot-1, unrolled
        rows.append(jnp.dot(ry, x_ref[p].astype(cdt),
                            preferred_element_type=jnp.float32))
    r = rows[0] if n_p == 1 else jnp.concatenate(rows, axis=0)   # (P*H_out, W)
    out = jnp.dot(r.astype(cdt), cx_ref[...],
                  preferred_element_type=jnp.float32)            # (P*H_out, TW)
    o_ref[...] = out.reshape(n_p, h_out, tw).astype(o_ref.dtype)


def stn_forward_pallas(x_nchw, *, use_bf16=True, max_plane_batch=4):
    """Pallas port of STNResUNet.forward -> (resampled image, theta)."""
    N, C, H, W = x_nchw.shape
    extentx, extenty, t00, t11, t02, t12 = _stn_theta_consts(H, W)
    H_out, W_out = extenty, extentx

    theta = jnp.broadcast_to(
        jnp.array([[t00, 0.0, t02], [0.0, t11, t12]], jnp.float32), (N, 2, 3))

    mat_dtype = jnp.bfloat16 if use_bf16 else jnp.float32

    # Exact factorization of affine_grid + bilinear grid_sample (axis-aligned
    # theta): out = Ry @ X @ Cx.  Built once at trace time (tiny).
    ry = _interp_matrix(t11, t12, H_out, H).T          # (H_out, H_in)
    cx = _interp_matrix(t00, t02, W_out, W)            # (W_in, W_out)

    # Trace-time row band actually sampled by the hard-coded bbox, widened to a
    # single sublane-aligned block so it is a constant BlockSpec block index.
    r_lo, r_hi = _tap_band(t11, t12, H_out, H)
    HB, row_blk = _covering_block(r_lo, r_hi, H, 8)
    ry_band = ry[:, row_blk * HB:row_blk * HB + HB].astype(mat_dtype)  # (H_out, HB)
    cx = cx.astype(mat_dtype)

    n_planes = N * C
    P = min(_pick_plane_batch(n_planes, max_plane_batch), n_planes)
    n_groups = n_planes // P

    # Column blocking: keep Cx fully resident (single block) when the plane
    # axis already provides >=2 grid steps; otherwise split the output columns
    # in two so a v7x megacore still gets two parallel steps.
    if n_groups >= 2 or W_out % 256 != 0:
        tw = W_out
    else:
        tw = W_out // 2
    n_cols = W_out // tw

    planes = x_nchw.reshape(n_planes, H, W)            # no dtype round-trip
    out_dtype = x_nchw.dtype

    grid_spec = pltpu.PrefetchScalarGridSpec(
        num_scalar_prefetch=0,
        grid=(n_cols, n_groups),                       # cx varies only on slow axis
        in_specs=[
            pl.BlockSpec((P, HB, W), lambda j, g: (g, row_blk, 0)),
            pl.BlockSpec((H_out, HB), lambda j, g: (0, 0)),
            pl.BlockSpec((W, tw), lambda j, g: (0, j)),
        ],
        out_specs=pl.BlockSpec((P, H_out, tw), lambda j, g: (g, 0, j)),
    )

    x_isz = jnp.dtype(x_nchw.dtype).itemsize
    m_isz = jnp.dtype(mat_dtype).itemsize
    o_isz = jnp.dtype(out_dtype).itemsize
    step_bytes = (P * HB * W * x_isz + H_out * HB * m_isz + W * tw * m_isz
                  + P * H_out * tw * o_isz + P * H_out * max(W, tw) * 4)
    vmem_need = 2 * step_bytes                          # double-buffered estimate
    compiler_params = pltpu.CompilerParams(
        dimension_semantics=("parallel", "parallel"),
        vmem_limit_bytes=int(1.5 * vmem_need) if vmem_need > 12 * 2**20 else None,
    )

    cost = pl.CostEstimate(
        flops=2 * n_planes * H_out * W * (HB + W_out),
        transcendentals=0,
        bytes_accessed=(n_cols * n_planes * HB * W * x_isz
                        + W * W_out * m_isz + H_out * HB * m_isz
                        + n_planes * H_out * W_out * o_isz),
    )

    out = pl.pallas_call(
        _stn_sample_kernel,
        out_shape=jax.ShapeDtypeStruct((n_planes, H_out, W_out), out_dtype),
        grid_spec=grid_spec,
        compiler_params=compiler_params,
        cost_estimate=cost,
    )(planes, ry_band, cx)

    return out.reshape(N, C, H_out, W_out), theta


def stn_forward_ref(x_nchw):
    """Plain-JAX reference: full (non-separable) affine_grid + grid_sample."""
    N, C, H, W = x_nchw.shape
    extentx, extenty, t00, t11, t02, t12 = _stn_theta_consts(H, W)
    H_out, W_out = extenty, extentx
    theta = jnp.broadcast_to(
        jnp.array([[t00, 0.0, t02], [0.0, t11, t12]], jnp.float32), (N, 2, 3))

    ys = jnp.linspace(-1.0, 1.0, H_out, dtype=jnp.float32)
    xs = jnp.linspace(-1.0, 1.0, W_out, dtype=jnp.float32)
    gx = t00 * xs[None, :] + 0.0 * ys[:, None] + t02
    gy = 0.0 * xs[None, :] + t11 * ys[:, None] + t12
    px = (gx + 1.0) * 0.5 * (W - 1)
    py = (gy + 1.0) * 0.5 * (H - 1)
    x0 = jnp.floor(px).astype(jnp.int32); x1 = x0 + 1
    y0 = jnp.floor(py).astype(jnp.int32); y1 = y0 + 1
    wx1 = px - x0.astype(jnp.float32); wx0 = 1.0 - wx1
    wy1 = py - y0.astype(jnp.float32); wy0 = 1.0 - wy1

    xf = x_nchw.astype(jnp.float32)

    def tap(yy, xx):
        valid = ((yy >= 0) & (yy < H) & (xx >= 0) & (xx < W)).astype(jnp.float32)
        yc = jnp.clip(yy, 0, H - 1)
        xc = jnp.clip(xx, 0, W - 1)
        return xf[:, :, yc, xc] * valid[None, None]

    out = (tap(y0, x0) * (wy0 * wx0)[None, None]
           + tap(y0, x1) * (wy0 * wx1)[None, None]
           + tap(y1, x0) * (wy1 * wx0)[None, None]
           + tap(y1, x1) * (wy1 * wx1)[None, None])
    return out, theta


if __name__ == "__main__":
    root = jax.random.PRNGKey(0)
    k1, k2 = jax.random.split(root)

    # 1) Module-faithful shape (STNBlock's own forward only accepts batch=1,
    #    single channel).  f32 path validates the exact factorization.
    x1 = jax.random.normal(k1, (1, 1, 256, 256), jnp.float32)
    out1, th1 = stn_forward_pallas(x1, use_bf16=False)
    out1 = jax.block_until_ready(out1)
    th1 = jax.block_until_ready(th1)
    ref1, rth1 = stn_forward_ref(x1)
    ref1 = jax.block_until_ready(ref1)
    assert out1.shape == (1, 1, 64, 2048), out1.shape
    assert th1.shape == (1, 2, 3), th1.shape
    assert jnp.allclose(th1, rth1, atol=1e-6), "theta mismatch"
    assert jnp.allclose(out1, ref1, atol=1e-4, rtol=1e-4), \
        "f32 grid_sample mismatch vs JAX reference"

    # 2) bf16 MXU path + P-plane batching + resident Cx.  The resample math is
    #    per-plane, so extra (batch, channel) planes just exercise the batched
    #    grid (the PyTorch module itself only takes (1,1,H,W)).
    x2 = jax.random.normal(k2, (2, 4, 256, 256), jnp.float32)
    out2, th2 = stn_forward_pallas(x2, use_bf16=True)
    out2 = jax.block_until_ready(out2)
    th2 = jax.block_until_ready(th2)
    ref2, _ = stn_forward_ref(x2)
    ref2 = jax.block_until_ready(ref2)
    assert out2.shape == (2, 4, 64, 2048), out2.shape
    assert jnp.allclose(out2, ref2, atol=5e-2, rtol=5e-2), \
        "bf16 grid_sample mismatch vs JAX reference"
    assert float(jnp.mean(jnp.abs(out2 - ref2))) < 5e-3, "bf16 mean error too large"

    print("KERNEL_OK")
</pallas_src>

<mosaic_0001>
module attributes {stable_mosaic.version = 11 : i64} {
  func.func @_stn_sample_kernel(%arg0: i32, %arg1: i32, %arg2: memref<1x120x256xf32, #tpu.memory_space<vmem>>, %arg3: memref<64x120xf32, #tpu.memory_space<vmem>>, %arg4: memref<256x1024xf32, #tpu.memory_space<vmem>>, %arg5: memref<1x64x1024xf32, #tpu.memory_space<vmem>>) attributes {dimension_semantics = [#tpu.dimension_semantics<parallel>, #tpu.dimension_semantics<parallel>], iteration_bounds = array<i64: 2, 1>, scalar_prefetch = 0 : i64, scratch_operands = 0 : i64, tpu.core_type = #tpu.core_type<tc>, window_params = [{transform_indices = @transform_0, window_bounds = array<i64: 1, 120, 256>}, {pipeline_mode = #tpu.pipeline_mode<synchronous>, transform_indices = @transform_1, window_bounds = array<i64: 64, 120>}, {transform_indices = @transform_2, window_bounds = array<i64: 256, 1024>}, {transform_indices = @transform_3, window_bounds = array<i64: 1, 64, 1024>}]} {
    %c0 = arith.constant 0 : index
    %c0_0 = arith.constant 0 : index
    %0 = vector.load %arg3[%c0, %c0_0] : memref<64x120xf32, #tpu.memory_space<vmem>>, vector<64x120xf32>
    %c0_1 = arith.constant 0 : index
    %c0_2 = arith.constant 0 : index
    %c0_3 = arith.constant 0 : index
    %1 = vector.load %arg2[%c0_1, %c0_2, %c0_3] : memref<1x120x256xf32, #tpu.memory_space<vmem>>, vector<1x120x256xf32>
    %2 = vector.shape_cast %1 : vector<1x120x256xf32> to vector<120x256xf32>
    %cst = arith.constant dense<0.000000e+00> : vector<64x256xf32>
    %3 = tpu.matmul %0, %2, %cst {dimension_numbers = #tpu.dot_dimension_numbers<[1], [0], [0], [1], [0, 0, 1, 1], [], []>} : vector<64x120xf32>, vector<120x256xf32>, vector<64x256xf32> -> vector<64x256xf32>
    %c0_4 = arith.constant 0 : index
    %c0_5 = arith.constant 0 : index
    %4 = vector.load %arg4[%c0_4, %c0_5] : memref<256x1024xf32, #tpu.memory_space<vmem>>, vector<256x1024xf32>
    %cst_6 = arith.constant dense<0.000000e+00> : vector<64x1024xf32>
    %5 = tpu.matmul %3, %4, %cst_6 {dimension_numbers = #tpu.dot_dimension_numbers<[1], [0], [0], [1], [0, 0, 1, 1], [], []>} : vector<64x256xf32>, vector<256x1024xf32>, vector<64x1024xf32> -> vector<64x1024xf32>
    %6 = vector.shape_cast %5 : vector<64x1024xf32> to vector<1x64x1024xf32>
    %c0_7 = arith.constant 0 : index
    %c0_8 = arith.constant 0 : index
    %c0_9 = arith.constant 0 : index
    %7 = vector.load %arg5[%c0_7, %c0_8, %c0_9] : memref<1x64x1024xf32, #tpu.memory_space<vmem>>, vector<1x64x1024xf32>
    tpu.vector_store %arg5[%c0_7, %c0_8, %c0_9], %6 {strides = array<i32>} : memref<1x64x1024xf32, #tpu.memory_space<vmem>>, vector<1x64x1024xf32>,
    return
  }
  func.func @transform_0(%arg0: i32, %arg1: i32) -> (i32, i32, i32) {
    %c0_i32 = arith.constant 0 : i32
    %c0_i32_0 = arith.constant 0 : i32
    %c0_i32_1 = arith.constant 0 : i32
    return %arg1, %c0_i32, %c0_i32_0 : i32, i32, i32
  }
  func.func @transform_1(%arg0: i32, %arg1: i32) -> (i32, i32) {
    %c0_i32 = arith.constant 0 : i32
    %c0_i32_0 = arith.constant 0 : i32
    %c0_i32_1 = arith.constant 0 : i32
    return %c0_i32, %c0_i32_0 : i32, i32
  }
  func.func @transform_2(%arg0: i32, %arg1: i32) -> (i32, i32) {
    %c0_i32 = arith.constant 0 : i32
    %c0_i32_0 = arith.constant 0 : i32
    return %c0_i32, %arg0 : i32, i32
  }
  func.func @transform_3(%arg0: i32, %arg1: i32) -> (i32, i32, i32) {
    %c0_i32 = arith.constant 0 : i32
    %c0_i32_0 = arith.constant 0 : i32
    return %arg1, %c0_i32, %arg0 : i32, i32, i32
  }
}

</mosaic_0001>

<bundles_post_ra>
// kernel: tpu_custom_call.1
= control target key start
LH: loop header
LB: loop body
LE: loop exit
PB: predicated region body
PF: predicated region fallthrough
CT: control target
= control target key end

     0   :  { %8 = vsyncpa [#allocation3], 0  ;;  %s2630_s0 = inlined_call_operand.hbm [shape: f32[1,256,256], index: 0, kind: input, shape index: {}]   ;;  %s2631_s1 = inlined_call_operand.hbm [shape: f32[64,120], index: 1, kind: input, shape index: {}]   ;;  %s2632_s2 = inlined_call_operand.hbm [shape: f32[256,2048], index: 2, kind: input, shape index: {}]   ;;  %s2633_s3 = inlined_call_operand.hbm [shape: f32[1,64,2048], index: 3, kind: output, shape index: {}]  }
   0x1   :  { %9 = vsyncpa [#allocation6], 0 }
   0x2   :  { %10 = vsyncpa [#allocation4], 0 }
   0x3   :  { %12 = vsyncpa [#allocation4 + $0x1], 0  ;;  %s1929_s12 = smov 0   ;;  %s1931_s13 = smov 0  }
   0x4   :  { %s1933_s14 = smov 0   ;;  %s1935_s15 = smov 0  }
   0x5   :  { %s1937_s16 = smov 0   ;;  %s1939_s17 = smov 0  }
   0x6 LB: > { %s1960_s18 = sadd.s32 4294967295, %s1892_s17   ;;  %s1310_s19 = sadd.s32 4294967294, %s1892_s17   ;;  %s1892_s17 = sphi %s1939_s17, %s18_s17   ;;  %s1888_s16 = sphi %s1937_s16, %s2660_s16   ;;  %s1884_s15 = sphi %s1935_s15, %s2659_s15   ;;  %s1880_s14 = sphi %s1933_s14, %s2658_s14   ;;  %s1876_s13 = sphi %s1931_s13, %s2657_s13   ;;  %s1872_s12 = sphi %s1929_s12, %s2656_s12  }
   0x7   : > { %s84_s20 = sadd.s32 1, %s1880_s14  ;;  %p91_p0 = scmp.ne.s32.totalorder %s1880_s14, %s1876_s13 }
   0x8   : > { %p92_p1 = scmp.eq.s32.totalorder %s1892_s17, 0  ;;  %p97_p2 = scmp.ne.s32.totalorder %s1876_s13, %s1872_s12 }
   0x9   : > { %p2634_p3 = scmp.eq.s32.totalorder %s1960_s18, 0  ;;  %p123_p4 = scmp.eq.s32.totalorder %s1960_s18, 1 }
   0xa   : > { %p1971_p5 = por %p92_p1, %p91_p0  ;;  %p129_p6 = scmp.eq.s32.totalorder %s1310_s19, 1 }
   0xb   : > { %p1977_p7 = por %p2634_p3, %p97_p2  ;;  %p1981_p8 = por %p123_p4, %p91_p0 }
   0xc   : > { %p1985_p9 = por %p129_p6, %p97_p2  ;;  %p1311_p10 = scmp.ge.s32.totalorder %s1892_s17, 1 }
   0xd   : > { %s2640_s22 = scalar_select %p1977_p7, 1, 0 }
   0xe   : > { %s2641_s23 = scalar_select %p1981_p8, 1, 0 }
   0xf   : > { %s2642_s24 = scalar_select %p1985_p9, 1, 0 }
  0x10   : > { %p136_p11 = scmp.lt.s32.totalorder %s1892_s17, 3  ;;  %s1894_s26 = smov [#allocation2]  }
  0x11   : > { %s151_s27 = sshll.u32 %s1894_s26, 4  ;;  %p1651_p1 = scmp.lt.s32.totalorder %s1892_s17, 2  ;;  %s1995_s27 = int_to_ptr.vmem [resolvable:$true] %s151_s27 }
  0x12   : > { %p1991_p12 = pnand %p1311_p10, %p136_p11  ;;  %s1895_s29 = smov [#allocation5]  }
  0x13   : > { %s164_s30 = sshll.u32 %s1895_s29, 4  ;;  %p2009_p4 = pnand %p1651_p1, %p1971_p5  ;;  %s2013_s30 = int_to_ptr.vmem [resolvable:$true] %s164_s30 }
  0x14   : > { %s2643_s25 = scalar_select %p1991_p12, 1, 0 }
  0x15   : > { %p1634_p13 = pneg %p1991_p12  ;;  %s1716_s7 = scalar_lea.hbm %s2630_s0, 3840 }
  0x16   : > { %s2645_s4 = scalar_select %p2009_p4, 1, 0 }
  0x17   : > { %p2003_p2 = pnand %p1634_p13, %p2634_p3  ;;  %p1717_p6 = scmp.ne.s32.totalorder %s2630_s0, %s1716_s7 }
  0x18   : > { %s1721_s19 = scalar_lea.hbm %s2630_s0, 8192  ;;  %p1723_p1 = scmp.lt.u32.totalorder %s1716_s7, %s2630_s0 }
  0x19   : > { %p1718_p10 = pneg %p2003_p2  ;;  %p1722_p5 = scmp.lt.u32.totalorder %s1721_s19, %s1716_s7 }
  0x1b   : > { %p1719_p11 = pnand %p1718_p10, %p1717_p6  ;;  %p1724_p0 = por %p1723_p1, %p1722_p5 }
  0x1d   : > { %p1720_p13 = pneg %p1719_p11 }
  0x1f   : > { %p1725_p3 = pnand %p1724_p0, %p1720_p13 }
  0x21   : > { %1728 = shalt.err (!%p1725_p3)
}
  0x22   : > { %s1729_s29 = scalar_lea.vmem %s1995_s27, 3840  ;;  %p1737_p8 = scmp.lt.s32.totalorder %s1995_s27, %s1995_s27 }
  0x23   : > { %p1730_p9 = scmp.ne.s32.totalorder %s1995_s27, %s1729_s29  ;;  %p1738_p7 = scmp.lt.s32.totalorder %s1729_s29, %s1729_s29 }
  0x25   : > { %p1732_p6 = pnand %p1730_p9, %p1718_p10  ;;  %p1739_p12 = por %p1738_p7, %p1737_p8 }
  0x27   : > { %p1733_p11 = pneg %p1732_p6 }
  0x29   : > { %p1740_p4 = pnand %p1739_p12, %p1733_p11 }
  0x2b   : > { %1743 = shalt.err (!%p1740_p4)
}
  0x2c   : > { %s1896_s5 = smov 256   ;;  %s1897_s6 = smov 16  }
  0x2d   : > { %1637 = dma.hbm_to_vmem [thread:$0]  (!%p2003_p2), %s2630_s0, 3840, %s1995_s27, [#allocation3], %s1896_s5, %s1896_s5, %s1897_s6  }
  0x2e   : > { %s1744_s11 = scalar_lea.hbm %s2631_s1, 1024 }
  0x2f   : > { %p1745_p3 = scmp.ne.s32.totalorder %s2631_s1, %s1744_s11  ;;  %p1751_p9 = scmp.lt.u32.totalorder %s1744_s11, %s2631_s1 }
  0x31   : > { %p1747_p7 = pnand %p1745_p3, %p1718_p10 }
  0x33   : > { %p1748_p8 = pneg %p1747_p7 }
  0x35   : > { %p1753_p12 = pnand %p1751_p9, %p1748_p8 }
  0x37   : > { %1756 = shalt.err (!%p1753_p12)
}
  0x38   : > { %s1757_s27 = scalar_lea.vmem %s2013_s30, 1024  ;;  %p1765_p5 = scmp.lt.s32.totalorder %s2013_s30, %s2013_s30 }
  0x39   : > { %p1758_p0 = scmp.ne.s32.totalorder %s2013_s30, %s1757_s27  ;;  %p1766_p1 = scmp.lt.s32.totalorder %s1757_s27, %s1757_s27 }
  0x3b   : > { %p1760_p4 = pnand %p1758_p0, %p1718_p10  ;;  %p1767_p6 = por %p1766_p1, %p1765_p5 }
  0x3d   : > { %p1761_p13 = pneg %p1760_p4 }
  0x3f   : > { %p1768_p11 = pnand %p1767_p6, %p1761_p13 }
  0x41   : > { %1771 = shalt.err (!%p1768_p11)
}
  0x42   : > { %s1898_s5 = smov 128   ;;  %s1899_s6 = smov 8  }
  0x43   : > { %1640 = dma.hbm_to_vmem [thread:$0]  (!%p2003_p2), %s2631_s1, 1024, %s2013_s30, [#allocation6], %s1898_s5, %s1898_s5, %s1899_s6  }
  0x44   : > { %s178_s9 = sand.u32 1, %s1892_s17   ;;  %s30_s10 = sadd.s32 1, %s1888_s16 }
  0x45   : > { %s180_s11 = sand.u32 1, %s1880_s14   ;;  %p32_p10 = scmp.ge.s32.totalorder %s30_s10, 2 }
  0x46   : > { %s1315_s19 = sshll.u32 %s180_s11, 11  ;;  %s1336_s21 = sshll.u32 %s1888_s16, 10 }
  0x47   : > { %s2662_s10 = smov (%p32_p10, %s30_s10), 0  ;;  %s2079_s27 = scalar_lea.hbm %s2632_s2, %s1336_s21 }
  0x48   : > { %s182_s28 = scalar_lea.vmem [#allocation7], %s1315_s19  ;;  %s81_s5 = ssub.s32 %s1888_s16, %s2662_s10 }
  0x49   : > { %s189_s30 = sshll.u32 %s182_s28, 4  ;;  %p82_p2 = scmp.eq.s32.totalorder %s81_s5, 0  ;;  %s2083_s30 = int_to_ptr.vmem [resolvable:$true] %s189_s30 }
  0x4a   : > { %s2090_s7 = scalar_lea.sflag [#allocation3], %s178_s9  ;;  %s1772_s8 = scalar_lea.hbm %s2079_s27, 32768 }
  0x4b   : > { %s2088_s6 = scalar_select %p82_p2, %s1880_s14, %s84_s20  }
  0x4c   : > { %p1773_p3 = scmp.ne.s32.totalorder %s2079_s27, %s1772_s8  ;;  %p2646_p7 = scmp.ne.s32.totalorder %s2645_s4, 0 }
  0x4d   : > { %s1777_s21 = scalar_lea.hbm %s2632_s2, 65536  ;;  %p1778_p0 = scmp.lt.u32.totalorder %s2079_s27, %s2632_s2 }
  0x4e   : > { %p1774_p8 = pneg %p2646_p7  ;;  %p1779_p4 = scmp.lt.u32.totalorder %s1777_s21, %s1772_s8 }
  0x4f   : > { %p1781_p5 = scmp.lt.u32.totalorder %s1772_s8, %s2079_s27 }
  0x50   : > { %p1775_p9 = pnand %p1774_p8, %p1773_p3  ;;  %p1780_p13 = por %p1779_p4, %p1778_p0 }
  0x52   : > { %p1776_p12 = pneg %p1775_p9  ;;  %p1782_p1 = por %p1781_p5, %p1780_p13 }
  0x54   : > { %p1783_p6 = pnand %p1782_p1, %p1776_p12 }
  0x56   : > { %1786 = shalt.err (!%p1783_p6)
}
  0x57   : > { %s1787_s20 = scalar_lea.vmem %s2083_s30, 32768  ;;  %s1900_s9 = smov [#allocation7]  }
  0x58   : > { %p1788_p11 = scmp.ne.s32.totalorder %s2083_s30, %s1787_s20  ;;  %s1792_s28 = sshll.u32 %s1900_s9, 4  ;;  %s1793_s28 = int_to_ptr.vmem [resolvable:$false] %s1792_s28 }
  0x59   : > { %s1794_s5 = scalar_lea.vmem %s1793_s28, 65536  ;;  %p1795_p3 = scmp.lt.s32.totalorder %s2083_s30, %s1793_s28 }
  0x5a   : > { %p1790_p10 = pnand %p1788_p11, %p1774_p8  ;;  %p1796_p9 = scmp.lt.s32.totalorder %s1794_s5, %s1787_s20 }
  0x5c   : > { %p1791_p2 = pneg %p1790_p10  ;;  %p1797_p0 = por %p1796_p9, %p1795_p3 }
  0x5e   : > { %p1798_p4 = pnand %p1797_p0, %p1791_p2 }
  0x60   : > { %1801 = shalt.err (!%p1798_p4)
}
  0x61   : > { %s1901_s8 = smov 2048   ;;  %s1902_s11 = smov 1024  }
  0x62   : > { %s1903_s19 = smov 64   ;;  %p2647_p8 = scmp.ne.s32.totalorder %s2643_s25, 0 }
  0x63   : > { %1644 = dma.hbm_to_vmem [thread:$0]  (!%p2646_p7), %s2079_s27, 32768, %s2083_s30, %s2090_s7, %s1901_s8, %s1902_s11, %s1903_s19  }
  0x64   : > { %201 = sbr.rel (%p2647_p8) target bundleno = 684 (0x2ac), region = 32  ;;  %p2648_p12 = scmp.eq.s32.totalorder (!%p2647_p8), %s1960_s18, 0 }
  0x6b   : > { %1855 = dma.done.wait (%p2648_p12), [#allocation3], 3840   ;;  %p2649_p13 = pmov %p2648_p12 }
  0x6c   : > { %p2650_p5 = pmov %p2648_p12 }
  0x6d   : > { %1857 = vsyncadd (%p2649_p13), [#allocation3], 4294963456 }
  0x6e   : > { %1859 = dma.done.wait (%p2650_p5), [#allocation6], 1024   ;;  %p2651_p1 = pmov %p2650_p5 }
  0x6f   : > { %s211_s4 = sand.u32 1, %s1960_s18   ;;  %s2130_s27 = sand.u32 1, %s1876_s13  }
  0x70   : > { %1861 = vsyncadd (%p2651_p1), [#allocation6], 4294966272  ;;  %s1321_s25 = sshll.u32 %s2130_s27, 11  ;;  %s212_s30 = scalar_lea.sflag [#allocation3], %s211_s4 }
  0x71   : > { %s2133_s7 = scalar_lea.vmem [#allocation7], %s1321_s25  ;;  %p2652_p7 = scmp.ne.s32.totalorder %s2640_s22, 0 }
  0x73   : > { %1863 = dma.done.wait (%p2652_p7), %s212_s30, 32768  }
  0x74   : > { %1865 = vsyncadd (%p2652_p7), %s212_s30, 4294934528  ;;  %v1904_v0 = vmov 0.0   ;;  %v249_v1 = vld [vmem:[#allocation2 + $0x8] sm:$0xff]  ;;  %v251_v2 = vld [vmem:[#allocation2 + $0x18] sm:$0xff]  ;;  %vm278_vm0 = vcmask 982016   ;;  %s1322_s18 = sshll.u32 %s2130_s27, 9 }
  0x75   : > { %367 = vmatprep.mubr.f32.mxu0 %v1904_v0  ;;  %v248_v3 = vld [vmem:[#allocation2] sm:$0xff]  ;;  %v1338_v4 = vpack.c.bf16 %v251_v2, %v249_v1  ;;  %v250_v5 = vld [vmem:[#allocation2 + $0x10] sm:$0xff]  ;;  %v253_v6 = vld [vmem:[#allocation2 + $0x28] sm:$0xff]  ;;  %s2508_s22 = scalar_lea.vmem [#allocation8], %s1322_s18  ;;  %s1337_s21 = sshll.u32 %s1884_s15, 10 }
  0x76   : > { %v255_v7 = vld [vmem:[#allocation2 + $0x38] sm:$0xff]  ;;  %v1340_v8 = vpack.c.bf16 %v250_v5, %v248_v3  ;;  %v252_v10 = vld [vmem:[#allocation2 + $0x20] sm:$0xff]  ;;  %v254_v11 = vld [vmem:[#allocation2 + $0x30] sm:$0xff]  ;;  %s1204_s26 = sshll.u32 %s2508_s22, 4  ;;  %s2575_s9 = scalar_lea.hbm %s2633_s3, %s1337_s21  ;;  %s2577_s26 = int_to_ptr.vmem [resolvable:$true] %s1204_s26 }
  0x77   : > { %v1342_v9 = vpack.c.bf16 %v255_v7, %v253_v6  ;;  %v257_v12 = vld [vmem:[#allocation2 + $0x48] sm:$0xff]  ;;  %1339 = vmatprep.subr.bf16.mxu0 %v1338_v4  ;;  %v259_v13 = vld [vmem:[#allocation2 + $0x58] sm:$0xff]  ;;  %v1344_v14 = vpack.c.bf16 %v254_v11, %v252_v10  ;;  %v256_v16 = vld [vmem:[#allocation2 + $0x40] sm:$0xff]  ;;  %s1189_s15 = scalar_lea.sflag [#allocation4], %s2130_s27  ;;  %s1802_s28 = scalar_lea.vmem %s2577_s26, 8192 }
  0x78   : > { %1341 = vmatpush1.bf16.msra.mxu0 %v1340_v8  ;;  %v1346_v15 = vpack.c.bf16 %v259_v13, %v257_v12  ;;  %v258_v17 = vld [vmem:[#allocation2 + $0x50] sm:$0xff]  ;;  %v261_v18 = vld [vmem:[#allocation2 + $0x68] sm:$0xff]  ;;  %v263_v19 = vld [vmem:[#allocation2 + $0x78] sm:$0xff]  ;;  %p1803_p6 = scmp.ne.s32.totalorder %s2577_s26, %s1802_s28  ;;  %p2653_p11 = scmp.ne.s32.totalorder %s2641_s23, 0 }
  0x79   : > { %1343 = vmatprep.subr.bf16.mxu0 %v1342_v9  ;;  %v1348_v20 = vpack.c.bf16 %v258_v17, %v256_v16  ;;  %v1350_v21 = vpack.c.bf16 %v263_v19, %v261_v18  ;;  %v260_v22 = vld [vmem:[#allocation2 + $0x60] sm:$0xff]  ;;  %v262_v23 = vld [vmem:[#allocation2 + $0x70] sm:$0xff]  ;;  %v265_v24 = vld [vmem:[#allocation2 + $0x88] sm:$0xff]  ;;  %s1905_s5 = smov [#allocation8]  }
  0x7a   : > { %v267_v25 = vld [vmem:[#allocation2 + $0x98] sm:$0xff]  ;;  %v1352_v26 = vpack.c.bf16 %v262_v23, %v260_v22  ;;  %v264_v27 = vld [vmem:[#allocation2 + $0x80] sm:$0xff]  ;;  %v266_v30 = vld [vmem:[#allocation2 + $0x90] sm:$0xff]  ;;  %p1804_p10 = pnand %p1803_p6, %p2653_p11  ;;  %s1806_s8 = sshll.u32 %s1905_s5, 4  ;;  %s1807_s8 = int_to_ptr.vmem [resolvable:$false] %s1806_s8 }
  0x7b   : > { %v417_v28 = vld [vmem:[%s2133_s7 + $0x8] sm:$0xff]  ;;  %v1354_v29 = vpack.c.bf16 %v267_v25, %v265_v24  ;;  %v269_v31 = vld [vmem:[#allocation2 + $0xa8] sm:$0xff]  ;;  %v416_v35 = vld [vmem:[%s2133_s7] sm:$0xff]  ;;  %v1356_v40 = vpack.c.bf16 %v266_v30, %v264_v27  ;;  %s1808_s11 = scalar_lea.vmem %s1807_s8, 16384  ;;  %p1809_p3 = scmp.lt.s32.totalorder %s2577_s26, %s1807_s8 }
  0x7c   : > { %1345 = vmatpush1.bf16.msra.mxu0 %v1344_v14  ;;  %v425_v32 = vld [vmem:[%s2133_s7 + $0x48] sm:$0xff]  ;;  %v424_v36 = vld [vmem:[%s2133_s7 + $0x40] sm:$0xff]  ;;  %v268_v41 = vld [vmem:[#allocation2 + $0xa0] sm:$0xff]  ;;  %p1805_p2 = pneg %p1804_p10  ;;  %p1810_p9 = scmp.lt.s32.totalorder %s1808_s11, %s1802_s28 }
  0x7d   : > { %1347 = vmatprep.subr.bf16.mxu0 %v1346_v15  ;;  %v271_v33 = vld [vmem:[#allocation2 + $0xb8] sm:$0xff]  ;;  %v1366_v34 = vpack.c.bf16 %v425_v32, %v417_v28  ;;  %v1368_v37 = vpack.c.bf16 %v424_v36, %v416_v35  ;;  %v432_v43 = vld [vmem:[%s2133_s7 + $0x80] sm:$0xff]  ;;  %v273_v46 = vld [vmem:[#allocation2 + $0xc8] sm:$0xff] }
  0x7e   : > { %v433_v38 = vld [vmem:[%s2133_s7 + $0x88] sm:$0xff]  ;;  %v1358_v44 = vpack.c.bf16 %v271_v33, %v269_v31  ;;  %v270_v45 = vld [vmem:[#allocation2 + $0xb0] sm:$0xff]  ;;  %v272_v58 = vld [vmem:[#allocation2 + $0xc0] sm:$0xff]  ;;  %p1811_p0 = por %p1810_p9, %p1809_p3 }
  0x7f   : > { %v441_v39 = vld [vmem:[%s2133_s7 + $0xc8] sm:$0xff]  ;;  %1367 = vmatprep.subr.bf16.mxu1 %v1366_v34  ;;  %v440_v47 = vld [vmem:[%s2133_s7 + $0xc0] sm:$0xff]  ;;  %v1360_v55 = vpack.c.bf16 %v270_v45, %v268_v41  ;;  %v277_v6 = vld [vmem:[#allocation2 + $0xe8] sm:$0xff] }
  0x80   : > { %1349 = vmatpush1.bf16.msra.mxu0 %v1348_v20  ;;  %v1370_v42 = vpack.c.bf16 %v441_v39, %v433_v38  ;;  %1369 = vmatpush1.bf16.msra.mxu1 %v1368_v37  ;;  %v275_v48 = vld [vmem:[#allocation2 + $0xd8] sm:$0xff]  ;;  %v1372_v49 = vpack.c.bf16 %v440_v47, %v432_v43  ;;  %v448_v53 = vld [vmem:[%s2133_s7 + $0x100] sm:$0xff]  ;;  %v419_v7 = vld [vmem:[%s2133_s7 + $0x18] sm:$0xff]  ;;  %p1812_p4 = pnand %p1811_p0, %p1805_p2 }
  0x81   : > { %1351 = vmatprep.subr.bf16.mxu0 %v1350_v21  ;;  %v449_v50 = vld [vmem:[%s2133_s7 + $0x108] sm:$0xff]  ;;  %v456_v54 = vld [vmem:[%s2133_s7 + $0x140] sm:$0xff]  ;;  %v1362_v57 = vpack.c.bf16 %v275_v48, %v273_v46  ;;  %v427_v8 = vld [vmem:[%s2133_s7 + $0x58] sm:$0xff] }
  0x82   : > { %1371 = vmatprep.subr.bf16.mxu1 %v1370_v42  ;;  %v457_v51 = vld [vmem:[%s2133_s7 + $0x148] sm:$0xff]  ;;  %v274_v59 = vld [vmem:[#allocation2 + $0xd0] sm:$0xff]  ;;  %v1376_v60 = vpack.c.bf16 %v456_v54, %v448_v53  ;;  %v418_v10 = vld [vmem:[%s2133_s7 + $0x10] sm:$0xff]  ;;  %v1430_v17 = vpack.c.bf16 %v427_v8, %v419_v7 }
  0x83   : > { %v1374_v52 = vpack.c.bf16 %v457_v51, %v449_v50  ;;  %v465_v56 = vld [vmem:[%s2133_s7 + $0x188] sm:$0xff]  ;;  %v464_v63 = vld [vmem:[%s2133_s7 + $0x180] sm:$0xff]  ;;  %v1364_v4 = vpack.c.bf16 %v274_v59, %v272_v58  ;;  %v426_v11 = vld [vmem:[%s2133_s7 + $0x50] sm:$0xff] }
  0x84   : > { %1353 = vmatpush1.bf16.msra.mxu0 %v1352_v26  ;;  %1373 = vmatpush1.bf16.msra.mxu1 %v1372_v49  ;;  %v473_v61 = vld [vmem:[%s2133_s7 + $0x1c8] sm:$0xff]  ;;  %v472_v1 = vld [vmem:[%s2133_s7 + $0x1c0] sm:$0xff]  ;;  %v435_v12 = vld [vmem:[%s2133_s7 + $0x98] sm:$0xff]  ;;  %v1432_v21 = vpack.c.bf16 %v426_v11, %v418_v10 }
  0x85   : > { %1355 = vmatprep.subr.bf16.mxu0 %v1354_v29  ;;  %1375 = vmatprep.subr.bf16.mxu1 %v1374_v52  ;;  %v1378_v62 = vpack.c.bf16 %v473_v61, %v465_v56  ;;  %v481_v2 = vld [vmem:[%s2133_s7 + $0x208] sm:$0xff]  ;;  %v1380_v5 = vpack.c.bf16 %v472_v1, %v464_v63  ;;  %v443_v13 = vld [vmem:[%s2133_s7 + $0xd8] sm:$0xff]  ;;  %v480_v14 = vld [vmem:[%s2133_s7 + $0x200] sm:$0xff] }
  0x86   : > { %v489_v3 = vld [vmem:[%s2133_s7 + $0x248] sm:$0xff]  ;;  %v488_v15 = vld [vmem:[%s2133_s7 + $0x240] sm:$0xff]  ;;  %v276_v16 = vld [vmem:[#allocation2 + $0xe0] sm:$0xff]  ;;  %v1434_v22 = vpack.c.bf16 %v443_v13, %v435_v12 }
  0x87   : > { %v1382_v9 = vpack.c.bf16 %v489_v3, %v481_v2  ;;  %v497_v18 = vld [vmem:[%s2133_s7 + $0x288] sm:$0xff]  ;;  %v240_v20 = vld [vmem:[#allocation5] sm:$0xff]  ;;  %v434_v23 = vld [vmem:[%s2133_s7 + $0x90] sm:$0xff]  ;;  %v1384_v26 = vpack.c.bf16 %v488_v15, %v480_v14 }
  0x88   : > { %1357 = vmatpush1.bf16.msra.mxu0 %v1356_v40  ;;  %1377 = vmatpush1.bf16.msra.mxu1 %v1376_v60  ;;  %v505_v19 = vld [vmem:[%s2133_s7 + $0x2c8] sm:$0xff]  ;;  %v442_v24 = vld [vmem:[%s2133_s7 + $0xd0] sm:$0xff]  ;;  %v451_v25 = vld [vmem:[%s2133_s7 + $0x118] sm:$0xff] }
  0x89   : > { %1359 = vmatprep.subr.bf16.mxu0 %v1358_v44  ;;  %1379 = vmatprep.subr.bf16.mxu1 %v1378_v62  ;;  %v459_v27 = vld [vmem:[%s2133_s7 + $0x158] sm:$0xff]  ;;  %v1386_v28 = vpack.c.bf16 %v505_v19, %v497_v18  ;;  %v496_v29 = vld [vmem:[%s2133_s7 + $0x280] sm:$0xff]  ;;  %v513_v31 = vld [vmem:[%s2133_s7 + $0x308] sm:$0xff]  ;;  %v1436_v34 = vpack.c.bf16 %v442_v24, %v434_v23 }
  0x8a   : > { %v504_v30 = vld [vmem:[%s2133_s7 + $0x2c0] sm:$0xff]  ;;  %v521_v32 = vld [vmem:[%s2133_s7 + $0x348] sm:$0xff]  ;;  %v1438_v35 = vpack.c.bf16 %v459_v27, %v451_v25  ;;  %v450_v36 = vld [vmem:[%s2133_s7 + $0x110] sm:$0xff] }
  0x8b   : > { %v241_v33 = vld [vmem:[#allocation5 + $0x8] sm:$0xff]  ;;  %v458_v37 = vld [vmem:[%s2133_s7 + $0x150] sm:$0xff]  ;;  %v467_v38 = vld [vmem:[%s2133_s7 + $0x198] sm:$0xff]  ;;  %v1388_v39 = vpack.c.bf16 %v504_v30, %v496_v29  ;;  %v1390_v41 = vpack.c.bf16 %v521_v32, %v513_v31 }
  0x8c   : > { %1361 = vmatpush1.bf16.msra.mxu0 %v1360_v55  ;;  %1381 = vmatpush1.bf16.msra.mxu1 %v1380_v5  ;;  %v475_v40 = vld [vmem:[%s2133_s7 + $0x1d8] sm:$0xff]  ;;  %v512_v42 = vld [vmem:[%s2133_s7 + $0x300] sm:$0xff]  ;;  %v529_v44 = vld [vmem:[%s2133_s7 + $0x388] sm:$0xff]  ;;  %v1440_v47 = vpack.c.bf16 %v458_v37, %v450_v36 }
  0x8d   : > { %1363 = vmatprep.subr.bf16.mxu0 %v1362_v57  ;;  %1383 = vmatprep.subr.bf16.mxu1 %v1382_v9  ;;  %v520_v43 = vld [vmem:[%s2133_s7 + $0x340] sm:$0xff]  ;;  %v537_v45 = vld [vmem:[%s2133_s7 + $0x3c8] sm:$0xff]  ;;  %v242_v46 = vld [vmem:[#allocation5 + $0x10] sm:$0xff]  ;;  %v1442_v48 = vpack.c.bf16 %v475_v40, %v467_v38 }
  0x8e   : > { %v466_v49 = vld [vmem:[%s2133_s7 + $0x190] sm:$0xff]  ;;  %v483_v51 = vld [vmem:[%s2133_s7 + $0x218] sm:$0xff]  ;;  %v1392_v52 = vpack.c.bf16 %v520_v43, %v512_v42  ;;  %v1394_v54 = vpack.c.bf16 %v537_v45, %v529_v44  ;;  %v528_v55 = vld [vmem:[%s2133_s7 + $0x380] sm:$0xff] }
  0x8f   : > { %v474_v50 = vld [vmem:[%s2133_s7 + $0x1d0] sm:$0xff]  ;;  %v491_v53 = vld [vmem:[%s2133_s7 + $0x258] sm:$0xff]  ;;  %v536_v56 = vld [vmem:[%s2133_s7 + $0x3c0] sm:$0xff] }
  0x90   : > { %1365 = vmatpush1.bf16.msra.mxu0 %v1364_v4  ;;  %1385 = vmatpush1.bf16.msra.mxu1 %v1384_v26  ;;  %v545_v57 = vld [vmem:[%s2133_s7 + $0x408] sm:$0xff]  ;;  %v243_v59 = vld [vmem:[#allocation5 + $0x18] sm:$0xff]  ;;  %v1444_v60 = vpack.c.bf16 %v474_v50, %v466_v49  ;;  %v1446_v61 = vpack.c.bf16 %v491_v53, %v483_v51  ;;  %v482_v62 = vld [vmem:[%s2133_s7 + $0x210] sm:$0xff]  ;;  %v1396_v2 = vpack.c.bf16 %v536_v56, %v528_v55 }
  0x91   : > { %331 = vmatprep.subr.mxu0 %v277_v6  ;;  %1387 = vmatprep.subr.bf16.mxu1 %v1386_v28  ;;  %v553_v58 = vld [vmem:[%s2133_s7 + $0x448] sm:$0xff]  ;;  %v490_v63 = vld [vmem:[%s2133_s7 + $0x250] sm:$0xff]  ;;  %v499_v1 = vld [vmem:[%s2133_s7 + $0x298] sm:$0xff] }
  0x92   : > { %v507_v3 = vld [vmem:[%s2133_s7 + $0x2d8] sm:$0xff]  ;;  %v1398_v4 = vpack.c.bf16 %v553_v58, %v545_v57  ;;  %v544_v5 = vld [vmem:[%s2133_s7 + $0x400] sm:$0xff]  ;;  %v561_v7 = vld [vmem:[%s2133_s7 + $0x488] sm:$0xff]  ;;  %v1448_v10 = vpack.c.bf16 %v490_v63, %v482_v62 }
  0x93   : > { %v552_v6 = vld [vmem:[%s2133_s7 + $0x440] sm:$0xff]  ;;  %v569_v8 = vld [vmem:[%s2133_s7 + $0x4c8] sm:$0xff]  ;;  %v1450_v11 = vpack.c.bf16 %v507_v3, %v499_v1  ;;  %v498_v12 = vld [vmem:[%s2133_s7 + $0x290] sm:$0xff] }
  0x94   : > { %332 = vmatpush1.msra.mxu0 %v276_v16  ;;  %1389 = vmatpush1.bf16.msra.mxu1 %v1388_v39  ;;  %v244_v9 = vld [vmem:[#allocation5 + $0x20] sm:$0xff]  ;;  %v506_v13 = vld [vmem:[%s2133_s7 + $0x2d0] sm:$0xff]  ;;  %v515_v14 = vld [vmem:[%s2133_s7 + $0x318] sm:$0xff]  ;;  %v1400_v15 = vpack.c.bf16 %v552_v6, %v544_v5 }
  0x95   : > { %1323 = vmatmul.mubr.msk.f32.vlgmr.msra.gmra.mrb[0].mxu0 %vm278_vm0, %v240_v20  ;;  %1431 = vmatprep.subr.bf16.mxu0 %v1430_v17  ;;  %v523_v16 = vld [vmem:[%s2133_s7 + $0x358] sm:$0xff]  ;;  %v1402_v17 = vpack.c.bf16 %v569_v8, %v561_v7  ;;  %v560_v18 = vld [vmem:[%s2133_s7 + $0x480] sm:$0xff]  ;;  %v577_v20 = vld [vmem:[%s2133_s7 + $0x508] sm:$0xff]  ;;  %v1452_v23 = vpack.c.bf16 %v506_v13, %v498_v12 }
  0x96   : > { %373 = vmatprep.mubr.f32.mxu0 %v1904_v0  ;;  %1433 = vmatpush1.bf16.msra.mxu0 %v1432_v21  ;;  %v568_v19 = vld [vmem:[%s2133_s7 + $0x4c0] sm:$0xff]  ;;  %v585_v21 = vld [vmem:[%s2133_s7 + $0x548] sm:$0xff]  ;;  %v1454_v24 = vpack.c.bf16 %v523_v16, %v515_v14  ;;  %v514_v25 = vld [vmem:[%s2133_s7 + $0x310] sm:$0xff] }
  0x97   : > { %1435 = vmatprep.subr.bf16.mxu0 %v1434_v22  ;;  %1391 = vmatprep.subr.bf16.mxu1 %v1390_v41  ;;  %v245_v22 = vld [vmem:[#allocation5 + $0x28] sm:$0xff]  ;;  %v522_v26 = vld [vmem:[%s2133_s7 + $0x350] sm:$0xff]  ;;  %v531_v27 = vld [vmem:[%s2133_s7 + $0x398] sm:$0xff]  ;;  %v1404_v28 = vpack.c.bf16 %v568_v19, %v560_v18  ;;  %v1406_v30 = vpack.c.bf16 %v585_v21, %v577_v20 }
  0x98   : > { %1393 = vmatpush1.bf16.msra.mxu1 %v1392_v52  ;;  %v539_v29 = vld [vmem:[%s2133_s7 + $0x3d8] sm:$0xff]  ;;  %v576_v31 = vld [vmem:[%s2133_s7 + $0x500] sm:$0xff]  ;;  %v1456_v36 = vpack.c.bf16 %v522_v26, %v514_v25  ;;  %v530_v38 = vld [vmem:[%s2133_s7 + $0x390] sm:$0xff] }
  0x99   : > { %1324 = vmatmul.mubr.msk.f32.gmra.mrb[2].mxu0 %vm278_vm0, %v241_v33  ;;  %1395 = vmatprep.subr.bf16.mxu1 %v1394_v54  ;;  %v584_v32 = vld [vmem:[%s2133_s7 + $0x540] sm:$0xff]  ;;  %v593_v33 = vld [vmem:[%s2133_s7 + $0x588] sm:$0xff]  ;;  %v1458_v37 = vpack.c.bf16 %v539_v29, %v531_v27  ;;  %v538_v39 = vld [vmem:[%s2133_s7 + $0x3d0] sm:$0xff] }
  0x9a   : > { %379 = vmatprep.mubr.f32.mxu0 %v1904_v0  ;;  %1437 = vmatpush1.bf16.msra.mxu0 %v1436_v34  ;;  %v601_v34 = vld [vmem:[%s2133_s7 + $0x5c8] sm:$0xff]  ;;  %v547_v40 = vld [vmem:[%s2133_s7 + $0x418] sm:$0xff]  ;;  %v1408_v41 = vpack.c.bf16 %v584_v32, %v576_v31  ;;  %v592_v44 = vld [vmem:[%s2133_s7 + $0x580] sm:$0xff]  ;;  %v1460_v49 = vpack.c.bf16 %v538_v39, %v530_v38 }
  0x9b   : > { %1439 = vmatprep.subr.bf16.mxu0 %v1438_v35  ;;  %v246_v35 = vld [vmem:[#allocation5 + $0x30] sm:$0xff]  ;;  %v555_v42 = vld [vmem:[%s2133_s7 + $0x458] sm:$0xff]  ;;  %v1410_v43 = vpack.c.bf16 %v601_v34, %v593_v33  ;;  %v600_v45 = vld [vmem:[%s2133_s7 + $0x5c0] sm:$0xff] }
  0x9c   : > { %1397 = vmatpush1.bf16.msra.mxu1 %v1396_v2  ;;  %v1462_v50 = vpack.c.bf16 %v555_v42, %v547_v40  ;;  %v546_v51 = vld [vmem:[%s2133_s7 + $0x410] sm:$0xff]  ;;  %v563_v53 = vld [vmem:[%s2133_s7 + $0x498] sm:$0xff]  ;;  %v1412_v54 = vpack.c.bf16 %v600_v45, %v592_v44  ;;  %v616_v57 = vld [vmem:[%s2133_s7 + $0x640] sm:$0xff] }
  0x9d   : > { %1325 = vmatmul.mubr.msk.f32.gmra.mrb[4].mxu0 %vm278_vm0, %v242_v46  ;;  %1399 = vmatprep.subr.bf16.mxu1 %v1398_v4  ;;  %v609_v46 = vld [vmem:[%s2133_s7 + $0x608] sm:$0xff]  ;;  %v554_v52 = vld [vmem:[%s2133_s7 + $0x450] sm:$0xff]  ;;  %v571_v55 = vld [vmem:[%s2133_s7 + $0x4d8] sm:$0xff] }
  0x9e   : > { %385 = vmatprep.mubr.f32.mxu0 %v1904_v0  ;;  %1441 = vmatpush1.bf16.msra.mxu0 %v1440_v47  ;;  %v617_v47 = vld [vmem:[%s2133_s7 + $0x648] sm:$0xff]  ;;  %v562_v62 = vld [vmem:[%s2133_s7 + $0x490] sm:$0xff]  ;;  %v579_v1 = vld [vmem:[%s2133_s7 + $0x518] sm:$0xff] }
  0x9f   : > { %1443 = vmatprep.subr.bf16.mxu0 %v1442_v48  ;;  %v247_v48 = vld [vmem:[#allocation5 + $0x38] sm:$0xff]  ;;  %v1414_v56 = vpack.c.bf16 %v617_v47, %v609_v46  ;;  %v625_v58 = vld [vmem:[%s2133_s7 + $0x688] sm:$0xff]  ;;  %v570_v63 = vld [vmem:[%s2133_s7 + $0x4d0] sm:$0xff] }
  0xa0   : > { %1401 = vmatpush1.bf16.msra.mxu1 %v1400_v15  ;;  %v587_v3 = vld [vmem:[%s2133_s7 + $0x558] sm:$0xff]  ;;  %v624_v5 = vld [vmem:[%s2133_s7 + $0x680] sm:$0xff]  ;;  %v641_v7 = vld [vmem:[%s2133_s7 + $0x708] sm:$0xff] }
  0xa1   : > { %1326 = vmatmul.mubr.msk.f32.gmra.mrb[6].mxu0 %vm278_vm0, %v243_v59  ;;  %1403 = vmatprep.subr.bf16.mxu1 %v1402_v17  ;;  %v633_v59 = vld [vmem:[%s2133_s7 + $0x6c8] sm:$0xff]  ;;  %v632_v6 = vld [vmem:[%s2133_s7 + $0x6c0] sm:$0xff]  ;;  %v586_v12 = vld [vmem:[%s2133_s7 + $0x550] sm:$0xff] }
  0xa2   : > { %391 = vmatprep.mubr.f32.mxu0 %v1904_v0  ;;  %1445 = vmatpush1.bf16.msra.mxu0 %v1444_v60  ;;  %v1464_v60 = vpack.c.bf16 %v554_v52, %v546_v51  ;;  %v1418_v4 = vpack.c.bf16 %v633_v59, %v625_v58  ;;  %v649_v8 = vld [vmem:[%s2133_s7 + $0x748] sm:$0xff]  ;;  %v595_v13 = vld [vmem:[%s2133_s7 + $0x598] sm:$0xff]  ;;  %v1420_v14 = vpack.c.bf16 %v632_v6, %v624_v5  ;;  %v640_v17 = vld [vmem:[%s2133_s7 + $0x700] sm:$0xff] }
  0xa3   : > { %1447 = vmatprep.subr.bf16.mxu0 %v1446_v61  ;;  %v1466_v61 = vpack.c.bf16 %v571_v55, %v563_v53  ;;  %v603_v15 = vld [vmem:[%s2133_s7 + $0x5d8] sm:$0xff]  ;;  %v1422_v16 = vpack.c.bf16 %v649_v8, %v641_v7  ;;  %v648_v18 = vld [vmem:[%s2133_s7 + $0x740] sm:$0xff]  ;;  %v657_v19 = vld [vmem:[%s2133_s7 + $0x788] sm:$0xff] }
  0xa4   : > { %1405 = vmatpush1.bf16.msra.mxu1 %v1404_v28  ;;  %v665_v20 = vld [vmem:[%s2133_s7 + $0x7c8] sm:$0xff]  ;;  %v611_v25 = vld [vmem:[%s2133_s7 + $0x618] sm:$0xff]  ;;  %v1424_v26 = vpack.c.bf16 %v648_v18, %v640_v17  ;;  %v656_v29 = vld [vmem:[%s2133_s7 + $0x780] sm:$0xff] }
  0xa5   : > { %1327 = vmatmul.mubr.msk.f32.gmra.mrb[8].mxu0 %vm278_vm0, %v244_v9  ;;  %1407 = vmatprep.subr.bf16.mxu1 %v1406_v30  ;;  %v1468_v9 = vpack.c.bf16 %v570_v63, %v562_v62  ;;  %v619_v27 = vld [vmem:[%s2133_s7 + $0x658] sm:$0xff]  ;;  %v1426_v28 = vpack.c.bf16 %v665_v20, %v657_v19  ;;  %v664_v30 = vld [vmem:[%s2133_s7 + $0x7c0] sm:$0xff]  ;;  %v610_v33 = vld [vmem:[%s2133_s7 + $0x610] sm:$0xff] }
  0xa6   : > { %397 = vmatprep.mubr.f32.mxu0 %v1904_v0  ;;  %1449 = vmatpush1.bf16.msra.mxu0 %v1448_v10  ;;  %v1470_v10 = vpack.c.bf16 %v587_v3, %v579_v1  ;;  %v1478_v32 = vpack.c.bf16 %v619_v27, %v611_v25  ;;  %v618_v34 = vld [vmem:[%s2133_s7 + $0x650] sm:$0xff]  ;;  %v643_v42 = vld [vmem:[%s2133_s7 + $0x718] sm:$0xff]  ;;  %v421_v55 = vld [vmem:[%s2133_s7 + $0x28] sm:$0xff] }
  0xa7   : > { %1451 = vmatprep.subr.bf16.mxu0 %v1450_v11  ;;  %v578_v11 = vld [vmem:[%s2133_s7 + $0x510] sm:$0xff]  ;;  %v1480_v38 = vpack.c.bf16 %v618_v34, %v610_v33  ;;  %v431_v58 = vld [vmem:[%s2133_s7 + $0x78] sm:$0xff]  ;;  %v437_v1 = vld [vmem:[%s2133_s7 + $0xa8] sm:$0xff] }
  0xa8   : > { %1409 = vmatpush1.bf16.msra.mxu1 %v1408_v41  ;;  %v1472_v21 = vpack.c.bf16 %v586_v12, %v578_v11  ;;  %v626_v40 = vld [vmem:[%s2133_s7 + $0x690] sm:$0xff]  ;;  %v439_v3 = vld [vmem:[%s2133_s7 + $0xb8] sm:$0xff]  ;;  %v436_v8 = vld [vmem:[%s2133_s7 + $0xa0] sm:$0xff] }
  0xa9   : > { %1328 = vmatmul.mubr.msk.f32.gmra.mrb[10].mxu0 %vm278_vm0, %v245_v22  ;;  %1411 = vmatprep.subr.bf16.mxu1 %v1410_v43  ;;  %v1474_v22 = vpack.c.bf16 %v603_v15, %v595_v13  ;;  %v634_v41 = vld [vmem:[%s2133_s7 + $0x6d0] sm:$0xff]  ;;  %v651_v43 = vld [vmem:[%s2133_s7 + $0x758] sm:$0xff]  ;;  %v453_v15 = vld [vmem:[%s2133_s7 + $0x128] sm:$0xff] }
  0xaa   : > { %403 = vmatprep.mubr.f32.mxu0 %v1904_v0  ;;  %1453 = vmatpush1.bf16.msra.mxu0 %v1452_v23  ;;  %v594_v23 = vld [vmem:[%s2133_s7 + $0x590] sm:$0xff]  ;;  %v1484_v44 = vpack.c.bf16 %v634_v41, %v626_v40  ;;  %v1486_v45 = vpack.c.bf16 %v651_v43, %v643_v42  ;;  %v455_v17 = vld [vmem:[%s2133_s7 + $0x138] sm:$0xff]  ;;  %v485_v43 = vld [vmem:[%s2133_s7 + $0x228] sm:$0xff] }
  0xab   : > { %1455 = vmatprep.subr.bf16.mxu0 %v1454_v24  ;;  %v602_v24 = vld [vmem:[%s2133_s7 + $0x5d0] sm:$0xff]  ;;  %v463_v18 = vld [vmem:[%s2133_s7 + $0x178] sm:$0xff] }
  0xac   : > { %1413 = vmatpush1.bf16.msra.mxu1 %v1412_v54  ;;  %v1476_v31 = vpack.c.bf16 %v602_v24, %v594_v23  ;;  %v642_v46 = vld [vmem:[%s2133_s7 + $0x710] sm:$0xff]  ;;  %v460_v23 = vld [vmem:[%s2133_s7 + $0x160] sm:$0xff] }
  0xad   : > { %1329 = vmatmul.mubr.msk.f32.gmra.mrb[12].mxu0 %vm278_vm0, %v246_v35  ;;  %1415 = vmatprep.subr.bf16.mxu1 %v1414_v56  ;;  %v1428_v35 = vpack.c.bf16 %v664_v30, %v656_v29  ;;  %v650_v47 = vld [vmem:[%s2133_s7 + $0x750] sm:$0xff]  ;;  %v429_v56 = vld [vmem:[%s2133_s7 + $0x68] sm:$0xff] }
  0xae   : > { %409 = vmatprep.mubr.f32.mxu0 %v1904_v0  ;;  %1457 = vmatpush1.bf16.msra.mxu0 %v1456_v36  ;;  %v608_v0 = vld [vmem:[%s2133_s7 + $0x600] sm:$0xff]  ;;  %v627_v36 = vld [vmem:[%s2133_s7 + $0x698] sm:$0xff]  ;;  %v658_v52 = vld [vmem:[%s2133_s7 + $0x790] sm:$0xff] }
  0xaf   : > { %1459 = vmatprep.subr.bf16.mxu0 %v1458_v37  ;;  %v1416_v2 = vpack.c.bf16 %v616_v57, %v608_v0  ;;  %v635_v37 = vld [vmem:[%s2133_s7 + $0x6d8] sm:$0xff]  ;;  %v666_v53 = vld [vmem:[%s2133_s7 + $0x7d0] sm:$0xff]  ;;  %v1494_v57 = vpack.c.bf16 %v429_v56, %v421_v55  ;;  %v469_v29 = vld [vmem:[%s2133_s7 + $0x1a8] sm:$0xff] }
  0xb0   : > { %v1482_v39 = vpack.c.bf16 %v635_v37, %v627_v36  ;;  %v1492_v54 = vpack.c.bf16 %v666_v53, %v658_v52  ;;  %v423_v0 = vld [vmem:[%s2133_s7 + $0x38] sm:$0xff]  ;;  %v422_v62 = vld [vmem:[%s2133_s7 + $0x30] sm:$0xff]  ;;  %v477_v30 = vld [vmem:[%s2133_s7 + $0x1e8] sm:$0xff] }
  0xb1   : > { %1330 = vmatmul.mubr.msk.f32.gmra.mrb[14].mxu0 %vm278_vm0, %v247_v48  ;;  %1417 = vmatpush1.bf16.msra.mxu1 %v1416_v2  ;;  %v659_v48 = vld [vmem:[%s2133_s7 + $0x798] sm:$0xff]  ;;  %v1558_v59 = vpack.c.bf16 %v431_v58, %v423_v0  ;;  %v430_v63 = vld [vmem:[%s2133_s7 + $0x70] sm:$0xff]  ;;  %v445_v2 = vld [vmem:[%s2133_s7 + $0xe8] sm:$0xff] }
  0xb2   : > { %1461 = vmatpush1.bf16.msra.mxu0 %v1460_v49  ;;  %1419 = vmatprep.subr.bf16.mxu1 %v1418_v4  ;;  %v667_v49 = vld [vmem:[%s2133_s7 + $0x7d8] sm:$0xff]  ;;  %v1560_v7 = vpack.c.bf16 %v430_v63, %v422_v62  ;;  %v1498_v11 = vpack.c.bf16 %v445_v2, %v437_v1  ;;  %v438_v13 = vld [vmem:[%s2133_s7 + $0xb0] sm:$0xff]  ;;  %v468_v36 = vld [vmem:[%s2133_s7 + $0x1a0] sm:$0xff] }
  0xb3   : > { %1463 = vmatprep.subr.bf16.mxu0 %v1462_v50  ;;  %v1488_v50 = vpack.c.bf16 %v650_v47, %v642_v46  ;;  %v1490_v51 = vpack.c.bf16 %v667_v49, %v659_v48  ;;  %v447_v4 = vld [vmem:[%s2133_s7 + $0xf8] sm:$0xff]  ;;  %v454_v27 = vld [vmem:[%s2133_s7 + $0x130] sm:$0xff]  ;;  %v476_v37 = vld [vmem:[%s2133_s7 + $0x1e0] sm:$0xff] }
  0xb4   : > { %v1562_v12 = vpack.c.bf16 %v447_v4, %v439_v3  ;;  %v470_v41 = vld [vmem:[%s2133_s7 + $0x1b0] sm:$0xff]  ;;  %v495_v46 = vld [vmem:[%s2133_s7 + $0x278] sm:$0xff]  ;;  %v1508_v48 = vpack.c.bf16 %v476_v37, %v468_v36  ;;  %v501_v0 = vld [vmem:[%s2133_s7 + $0x2a8] sm:$0xff] }
  0xb5   : > { %1421 = vmatpush1.bf16.msra.mxu1 %v1420_v14  ;;  %v446_v14 = vld [vmem:[%s2133_s7 + $0xf0] sm:$0xff]  ;;  %v503_v58 = vld [vmem:[%s2133_s7 + $0x2b8] sm:$0xff]  ;;  %v500_v63 = vld [vmem:[%s2133_s7 + $0x2a0] sm:$0xff] }
  0xb6   : > { %1465 = vmatpush1.bf16.msra.mxu0 %v1464_v60  ;;  %1423 = vmatprep.subr.bf16.mxu1 %v1422_v16  ;;  %v420_v60 = vld [vmem:[%s2133_s7 + $0x20] sm:$0xff]  ;;  %v461_v16 = vld [vmem:[%s2133_s7 + $0x168] sm:$0xff]  ;;  %v478_v42 = vld [vmem:[%s2133_s7 + $0x1f0] sm:$0xff] }
  0xb7   : > { %1467 = vmatprep.subr.bf16.mxu0 %v1466_v61  ;;  %v428_v61 = vld [vmem:[%s2133_s7 + $0x60] sm:$0xff]  ;;  %v1502_v25 = vpack.c.bf16 %v461_v16, %v453_v15  ;;  %v1572_v49 = vpack.c.bf16 %v478_v42, %v470_v41  ;;  %v486_v55 = vld [vmem:[%s2133_s7 + $0x230] sm:$0xff]  ;;  %v549_v41 = vld [vmem:[%s2133_s7 + $0x428] sm:$0xff] }
  0xb8   : > { %v1496_v6 = vpack.c.bf16 %v428_v61, %v420_v60  ;;  %v494_v56 = vld [vmem:[%s2133_s7 + $0x270] sm:$0xff]  ;;  %v508_v1 = vld [vmem:[%s2133_s7 + $0x2e0] sm:$0xff]  ;;  %v557_v42 = vld [vmem:[%s2133_s7 + $0x468] sm:$0xff] }
  0xb9   : > { %1425 = vmatpush1.bf16.msra.mxu1 %v1424_v26  ;;  %v1566_v26 = vpack.c.bf16 %v463_v18, %v455_v17  ;;  %v1576_v62 = vpack.c.bf16 %v494_v56, %v486_v55  ;;  %v516_v16 = vld [vmem:[%s2133_s7 + $0x320] sm:$0xff]  ;;  %v565_v55 = vld [vmem:[%s2133_s7 + $0x4a8] sm:$0xff]  ;;  %v1526_v56 = vpack.c.bf16 %v557_v42, %v549_v41  ;;  %v615_v42 = vld [vmem:[%s2133_s7 + $0x638] sm:$0xff] }
  0xba   : > { %1469 = vmatpush1.bf16.msra.mxu0 %v1468_v9  ;;  %1427 = vmatprep.subr.bf16.mxu1 %v1426_v28  ;;  %v444_v9 = vld [vmem:[%s2133_s7 + $0xe0] sm:$0xff]  ;;  %v462_v28 = vld [vmem:[%s2133_s7 + $0x170] sm:$0xff]  ;;  %v621_v41 = vld [vmem:[%s2133_s7 + $0x668] sm:$0xff] }
  0xbb   : > { %1471 = vmatprep.subr.bf16.mxu0 %v1470_v10  ;;  %v1500_v20 = vpack.c.bf16 %v444_v9, %v436_v8  ;;  %v517_v8 = vld [vmem:[%s2133_s7 + $0x328] sm:$0xff]  ;;  %v524_v17 = vld [vmem:[%s2133_s7 + $0x360] sm:$0xff] }
  0xbc   : > { %v525_v9 = vld [vmem:[%s2133_s7 + $0x368] sm:$0xff]  ;;  %v540_v37 = vld [vmem:[%s2133_s7 + $0x3e0] sm:$0xff] }
  0xbd   : > { %1429 = vmatpush1.bf16.msra.mxu1 %v1428_v35  ;;  %v1568_v35 = vpack.c.bf16 %v462_v28, %v454_v27  ;;  %v535_v27 = vld [vmem:[%s2133_s7 + $0x3b8] sm:$0xff] }
  0xbe   : > { %1473 = vmatpush1.bf16.msra.mxu0 %v1472_v21  ;;  %1495 = vmatprep.subr.bf16.mxu1 %v1494_v57  ;;  %v1564_v21 = vpack.c.bf16 %v446_v14, %v438_v13  ;;  %v509_v57 = vld [vmem:[%s2133_s7 + $0x2e8] sm:$0xff]  ;;  %v1516_v14 = vpack.c.bf16 %v508_v1, %v500_v63  ;;  %v543_v28 = vld [vmem:[%s2133_s7 + $0x3f8] sm:$0xff]  ;;  %v564_v63 = vld [vmem:[%s2133_s7 + $0x4a0] sm:$0xff] }
  0xbf   : > { %1475 = vmatprep.subr.bf16.mxu0 %v1474_v22  ;;  %v452_v22 = vld [vmem:[%s2133_s7 + $0x120] sm:$0xff]  ;;  %v1514_v3 = vpack.c.bf16 %v509_v57, %v501_v0  ;;  %v1586_v36 = vpack.c.bf16 %v543_v28, %v535_v27  ;;  %v573_v57 = vld [vmem:[%s2133_s7 + $0x4e8] sm:$0xff]  ;;  %v607_v27 = vld [vmem:[%s2133_s7 + $0x5f8] sm:$0xff] }
  0xc0   : > { %v1504_v34 = vpack.c.bf16 %v460_v23, %v452_v22  ;;  %v518_v22 = vld [vmem:[%s2133_s7 + $0x330] sm:$0xff]  ;;  %v572_v1 = vld [vmem:[%s2133_s7 + $0x4e0] sm:$0xff] }
  0xc1   : > { %v526_v23 = vld [vmem:[%s2133_s7 + $0x370] sm:$0xff] }
  0xc2   : > { %1477 = vmatpush1.bf16.msra.mxu0 %v1476_v31  ;;  %v471_v31 = vld [vmem:[%s2133_s7 + $0x1b8] sm:$0xff] }
  0xc3   : > { %1479 = vmatprep.subr.bf16.mxu0 %v1478_v32  ;;  %v479_v32 = vld [vmem:[%s2133_s7 + $0x1f8] sm:$0xff] }
  0xc4   : > { %v1570_v40 = vpack.c.bf16 %v479_v32, %v471_v31  ;;  %v1584_v31 = vpack.c.bf16 %v526_v23, %v518_v22  ;;  %v532_v32 = vld [vmem:[%s2133_s7 + $0x3a0] sm:$0xff]  ;;  %v590_v22 = vld [vmem:[%s2133_s7 + $0x570] sm:$0xff]  ;;  %v597_v23 = vld [vmem:[%s2133_s7 + $0x5a8] sm:$0xff] }
  0xc6   : > { %1481 = vmatpush1.bf16.msra.mxu0 %v1480_v38 }
  0xc7   : > { %1483 = vmatprep.subr.bf16.mxu0 %v1482_v39  ;;  %v1506_v39 = vpack.c.bf16 %v477_v30, %v469_v29  ;;  %v1520_v30 = vpack.c.bf16 %v524_v17, %v516_v16  ;;  %v588_v16 = vld [vmem:[%s2133_s7 + $0x560] sm:$0xff] }
  0xca   : > { %1485 = vmatpush1.bf16.msra.mxu0 %v1484_v44  ;;  %v493_v44 = vld [vmem:[%s2133_s7 + $0x268] sm:$0xff] }
  0xcb   : > { %1487 = vmatprep.subr.bf16.mxu0 %v1486_v45  ;;  %v487_v45 = vld [vmem:[%s2133_s7 + $0x238] sm:$0xff]  ;;  %v1510_v53 = vpack.c.bf16 %v493_v44, %v485_v43 }
  0xcc   : > { %v551_v43 = vld [vmem:[%s2133_s7 + $0x438] sm:$0xff] }
  0xcd   : > { %v559_v44 = vld [vmem:[%s2133_s7 + $0x478] sm:$0xff] }
  0xce   : > { %1489 = vmatpush1.bf16.msra.mxu0 %v1488_v50  ;;  %v484_v50 = vld [vmem:[%s2133_s7 + $0x220] sm:$0xff]  ;;  %v1590_v0 = vpack.c.bf16 %v559_v44, %v551_v43  ;;  %v623_v43 = vld [vmem:[%s2133_s7 + $0x678] sm:$0xff] }
  0xcf   : > { %1491 = vmatprep.subr.bf16.mxu0 %v1490_v51  ;;  %v492_v51 = vld [vmem:[%s2133_s7 + $0x260] sm:$0xff] }
  0xd0   : > { %v1512_v61 = vpack.c.bf16 %v492_v51, %v484_v50  ;;  %v556_v50 = vld [vmem:[%s2133_s7 + $0x460] sm:$0xff] }
  0xd2   : > { %1493 = vmatpush1.bf16.msra.mxu0 %v1492_v54  ;;  %v1574_v54 = vpack.c.bf16 %v495_v46, %v487_v45  ;;  %v1524_v46 = vpack.c.bf16 %v540_v37, %v532_v32  ;;  %v604_v32 = vld [vmem:[%s2133_s7 + $0x5e0] sm:$0xff]  ;;  %v598_v37 = vld [vmem:[%s2133_s7 + $0x5b0] sm:$0xff] }
  0xd3   : > { %1559 = vmatprep.subr.bf16.mxu0 %v1558_v59  ;;  %v511_v59 = vld [vmem:[%s2133_s7 + $0x2f8] sm:$0xff] }
  0xd4   : > { %v1578_v4 = vpack.c.bf16 %v511_v59, %v503_v58  ;;  %v567_v58 = vld [vmem:[%s2133_s7 + $0x4b8] sm:$0xff] }
  0xd5   : > { %v575_v59 = vld [vmem:[%s2133_s7 + $0x4f8] sm:$0xff] }
 0x168   : > { %v2295_v5 = vpop.f32.mrb[0].mxu0 }
 0x169   : > { %v2299_v10 = vpop.f32.mrb[1].mxu0 }
 0x16a   : > { %736 = vmatprep.mubr.f32.mxu1 %v2299_v10  ;;  %849 = vmatprep.mubr.f32.mxu0 %v2299_v10 }
 0x16b   : > { %737 = vmatmul.mubr.f32.vlgmr.msra.gmra.mrb[0].mxu1 %v2295_v5  ;;  %850 = vmatmul.mubr.f32.vlgmr.msra.gmra.mrb[16].mxu0 %v2295_v5 }
 0x16c   : > { %1497 = vmatpush1.bf16.msra.mxu1 %v1496_v6  ;;  %1561 = vmatpush1.bf16.msra.mxu0 %v1560_v7  ;;  %v2311_v19 = vpop.f32.mrb[2].mxu0  ;;  %v502_v6 = vld [vmem:[%s2133_s7 + $0x2b0] sm:$0xff] }
 0x16d   : > { %v2315_v24 = vpop.f32.mrb[3].mxu0  ;;  %1499 = vmatprep.subr.bf16.mxu1 %v1498_v11  ;;  %1563 = vmatprep.subr.bf16.mxu0 %v1562_v12  ;;  %v510_v7 = vld [vmem:[%s2133_s7 + $0x2f0] sm:$0xff]  ;;  %v519_v11 = vld [vmem:[%s2133_s7 + $0x338] sm:$0xff] }
 0x16e   : > { %742 = vmatprep.mubr.f32.mxu1 %v2315_v24  ;;  %855 = vmatprep.mubr.f32.mxu0 %v2315_v24  ;;  %v527_v12 = vld [vmem:[%s2133_s7 + $0x378] sm:$0xff]  ;;  %v1580_v15 = vpack.c.bf16 %v510_v7, %v502_v6  ;;  %v566_v6 = vld [vmem:[%s2133_s7 + $0x4b0] sm:$0xff] }
 0x16f   : > { %743 = vmatmul.mubr.f32.gmra.mrb[2].mxu1 %v2311_v19  ;;  %856 = vmatmul.mubr.f32.gmra.mrb[18].mxu0 %v2311_v19  ;;  %v574_v7 = vld [vmem:[%s2133_s7 + $0x4f0] sm:$0xff] }
 0x170   : > { %1501 = vmatpush1.bf16.msra.mxu1 %v1500_v20  ;;  %1565 = vmatpush1.bf16.msra.mxu0 %v1564_v21  ;;  %v2327_v33 = vpop.f32.mrb[4].mxu0  ;;  %v1518_v20 = vpack.c.bf16 %v525_v9, %v517_v8  ;;  %v1582_v21 = vpack.c.bf16 %v527_v12, %v519_v11  ;;  %v581_v8 = vld [vmem:[%s2133_s7 + $0x528] sm:$0xff]  ;;  %v583_v11 = vld [vmem:[%s2133_s7 + $0x538] sm:$0xff] }
 0x171   : > { %v2331_v38 = vpop.f32.mrb[5].mxu0  ;;  %1503 = vmatprep.subr.bf16.mxu1 %v1502_v25  ;;  %1567 = vmatprep.subr.bf16.mxu0 %v1566_v26  ;;  %v533_v25 = vld [vmem:[%s2133_s7 + $0x3a8] sm:$0xff]  ;;  %v591_v12 = vld [vmem:[%s2133_s7 + $0x578] sm:$0xff] }
 0x172   : > { %748 = vmatprep.mubr.f32.mxu1 %v2331_v38  ;;  %861 = vmatprep.mubr.f32.mxu0 %v2331_v38  ;;  %v541_v26 = vld [vmem:[%s2133_s7 + $0x3e8] sm:$0xff] }
 0x173   : > { %749 = vmatmul.mubr.f32.gmra.mrb[4].mxu1 %v2327_v33  ;;  %862 = vmatmul.mubr.f32.gmra.mrb[20].mxu0 %v2327_v33  ;;  %v589_v9 = vld [vmem:[%s2133_s7 + $0x568] sm:$0xff] }
 0x174   : > { %1505 = vmatpush1.bf16.msra.mxu1 %v1504_v34  ;;  %1569 = vmatpush1.bf16.msra.mxu0 %v1568_v35  ;;  %v2343_v47 = vpop.f32.mrb[6].mxu0  ;;  %v1522_v35 = vpack.c.bf16 %v541_v26, %v533_v25  ;;  %v1534_v17 = vpack.c.bf16 %v589_v9, %v581_v8  ;;  %v605_v25 = vld [vmem:[%s2133_s7 + $0x5e8] sm:$0xff]  ;;  %v599_v26 = vld [vmem:[%s2133_s7 + $0x5b8] sm:$0xff] }
 0x175   : > { %v2347_v52 = vpop.f32.mrb[7].mxu0  ;;  %1507 = vmatprep.subr.bf16.mxu1 %v1506_v39  ;;  %1571 = vmatprep.subr.bf16.mxu0 %v1570_v40  ;;  %v534_v39 = vld [vmem:[%s2133_s7 + $0x3b0] sm:$0xff]  ;;  %v653_v8 = vld [vmem:[%s2133_s7 + $0x768] sm:$0xff]  ;;  %v647_v9 = vld [vmem:[%s2133_s7 + $0x738] sm:$0xff] }
 0x176   : > { %754 = vmatprep.mubr.f32.mxu1 %v2347_v52  ;;  %867 = vmatprep.mubr.f32.mxu0 %v2347_v52  ;;  %v542_v40 = vld [vmem:[%s2133_s7 + $0x3f0] sm:$0xff] }
 0x177   : > { %755 = vmatmul.mubr.f32.gmra.mrb[6].mxu1 %v2343_v47  ;;  %868 = vmatmul.mubr.f32.gmra.mrb[22].mxu0 %v2343_v47 }
 0x178   : > { %1509 = vmatpush1.bf16.msra.mxu1 %v1508_v48  ;;  %1573 = vmatpush1.bf16.msra.mxu0 %v1572_v49  ;;  %v2359_v60 = vpop.f32.mrb[8].mxu0  ;;  %v1588_v48 = vpack.c.bf16 %v542_v40, %v534_v39  ;;  %v548_v49 = vld [vmem:[%s2133_s7 + $0x420] sm:$0xff]  ;;  %v606_v39 = vld [vmem:[%s2133_s7 + $0x5f0] sm:$0xff]  ;;  %v613_v40 = vld [vmem:[%s2133_s7 + $0x628] sm:$0xff] }
 0x179   : > { %v2363_v2 = vpop.f32.mrb[9].mxu0  ;;  %1511 = vmatprep.subr.bf16.mxu1 %v1510_v53  ;;  %1575 = vmatprep.subr.bf16.mxu0 %v1574_v54  ;;  %v550_v53 = vld [vmem:[%s2133_s7 + $0x430] sm:$0xff] }
 0x17a   : > { %760 = vmatprep.mubr.f32.mxu1 %v2363_v2  ;;  %873 = vmatprep.mubr.f32.mxu0 %v2363_v2  ;;  %v558_v54 = vld [vmem:[%s2133_s7 + $0x470] sm:$0xff] }
 0x17b   : > { %761 = vmatmul.mubr.f32.gmra.mrb[8].mxu1 %v2359_v60  ;;  %874 = vmatmul.mubr.f32.gmra.mrb[24].mxu0 %v2359_v60 }
 0x17c   : > { %1513 = vmatpush1.bf16.msra.mxu1 %v1512_v61  ;;  %1577 = vmatpush1.bf16.msra.mxu0 %v1576_v62  ;;  %v2375_v13 = vpop.f32.mrb[10].mxu0  ;;  %v1528_v61 = vpack.c.bf16 %v556_v50, %v548_v49  ;;  %v1592_v62 = vpack.c.bf16 %v558_v54, %v550_v53  ;;  %v620_v49 = vld [vmem:[%s2133_s7 + $0x660] sm:$0xff]  ;;  %v1542_v50 = vpack.c.bf16 %v621_v41, %v613_v40  ;;  %v614_v54 = vld [vmem:[%s2133_s7 + $0x630] sm:$0xff] }
 0x17d   : > { %v2379_v18 = vpop.f32.mrb[11].mxu0  ;;  %1515 = vmatprep.subr.bf16.mxu1 %v1514_v3  ;;  %1579 = vmatprep.subr.bf16.mxu0 %v1578_v4  ;;  %v1530_v3 = vpack.c.bf16 %v573_v57, %v565_v55  ;;  %v1594_v4 = vpack.c.bf16 %v575_v59, %v567_v58  ;;  %v1606_v53 = vpack.c.bf16 %v623_v43, %v615_v42  ;;  %v622_v55 = vld [vmem:[%s2133_s7 + $0x670] sm:$0xff]  ;;  %v631_v57 = vld [vmem:[%s2133_s7 + $0x6b8] sm:$0xff] }
 0x17e   : > { %766 = vmatprep.mubr.f32.mxu1 %v2379_v18  ;;  %879 = vmatprep.mubr.f32.mxu0 %v2379_v18  ;;  %v639_v58 = vld [vmem:[%s2133_s7 + $0x6f8] sm:$0xff] }
 0x17f   : > { %767 = vmatmul.mubr.f32.gmra.mrb[10].mxu1 %v2375_v13  ;;  %880 = vmatmul.mubr.f32.gmra.mrb[26].mxu0 %v2375_v13 }
 0x180   : > { %1517 = vmatpush1.bf16.msra.mxu1 %v1516_v14  ;;  %1581 = vmatpush1.bf16.msra.mxu0 %v1580_v15  ;;  %v2391_v29 = vpop.f32.mrb[12].mxu0  ;;  %v1596_v14 = vpack.c.bf16 %v574_v7, %v566_v6  ;;  %v580_v15 = vld [vmem:[%s2133_s7 + $0x520] sm:$0xff]  ;;  %v638_v6 = vld [vmem:[%s2133_s7 + $0x6f0] sm:$0xff]  ;;  %v645_v7 = vld [vmem:[%s2133_s7 + $0x728] sm:$0xff] }
 0x181   : > { %v2394_v34 = vpop.f32.mrb[13].mxu0  ;;  %1519 = vmatprep.subr.bf16.mxu1 %v1518_v20  ;;  %1583 = vmatprep.subr.bf16.mxu0 %v1582_v21  ;;  %v1598_v20 = vpack.c.bf16 %v591_v12, %v583_v11  ;;  %v582_v21 = vld [vmem:[%s2133_s7 + $0x530] sm:$0xff]  ;;  %v1536_v28 = vpack.c.bf16 %v588_v16, %v580_v15  ;;  %v655_v11 = vld [vmem:[%s2133_s7 + $0x778] sm:$0xff]  ;;  %v652_v15 = vld [vmem:[%s2133_s7 + $0x760] sm:$0xff]  ;;  %v1550_v16 = vpack.c.bf16 %v653_v8, %v645_v7 }
 0x182   : > { %772 = vmatprep.mubr.f32.mxu1 %v2394_v34  ;;  %885 = vmatprep.mubr.f32.mxu0 %v2394_v34 }
 0x183   : > { %773 = vmatmul.mubr.f32.gmra.mrb[12].mxu1 %v2391_v29  ;;  %886 = vmatmul.mubr.f32.gmra.mrb[28].mxu0 %v2391_v29 }
 0x184   : > { %1521 = vmatpush1.bf16.msra.mxu1 %v1520_v30  ;;  %1585 = vmatpush1.bf16.msra.mxu0 %v1584_v31  ;;  %v2407_v45 = vpop.f32.mrb[14].mxu0  ;;  %v1600_v30 = vpack.c.bf16 %v590_v22, %v582_v21  ;;  %v596_v31 = vld [vmem:[%s2133_s7 + $0x5a0] sm:$0xff]  ;;  %v654_v21 = vld [vmem:[%s2133_s7 + $0x770] sm:$0xff]  ;;  %v661_v22 = vld [vmem:[%s2133_s7 + $0x7a8] sm:$0xff] }
 0x185   : > { %v2411_v51 = vpop.f32.mrb[15].mxu0  ;;  %1523 = vmatprep.subr.bf16.mxu1 %v1522_v35  ;;  %1587 = vmatprep.subr.bf16.mxu0 %v1586_v36  ;;  %v1538_v35 = vpack.c.bf16 %v605_v25, %v597_v23  ;;  %v1602_v36 = vpack.c.bf16 %v607_v27, %v599_v26  ;;  %v1540_v44 = vpack.c.bf16 %v604_v32, %v596_v31  ;;  %v669_v23 = vld [vmem:[%s2133_s7 + $0x7e8] sm:$0xff]  ;;  %v663_v25 = vld [vmem:[%s2133_s7 + $0x7b8] sm:$0xff] }
 0x186   : > { %778 = vmatprep.mubr.f32.mxu1 %v2411_v51  ;;  %891 = vmatprep.mubr.f32.mxu0 %v2411_v51  ;;  %v671_v26 = vld [vmem:[%s2133_s7 + $0x7f8] sm:$0xff]  ;;  %v1554_v31 = vpack.c.bf16 %v669_v23, %v661_v22 }
 0x187   : > { %779 = vmatmul.mubr.f32.gmra.mrb[14].mxu1 %v2407_v45  ;;  %892 = vmatmul.mubr.f32.gmra.mrb[30].mxu0 %v2407_v45  ;;  %v1618_v32 = vpack.c.bf16 %v671_v26, %v663_v25 }
 0x188   : > { %1525 = vmatpush1.bf16.msra.mxu1 %v1524_v46  ;;  %1589 = vmatpush1.bf16.msra.mxu0 %v1588_v48  ;;  %v1604_v46 = vpack.c.bf16 %v606_v39, %v598_v37  ;;  %v612_v48 = vld [vmem:[%s2133_s7 + $0x620] sm:$0xff]  ;;  %v670_v37 = vld [vmem:[%s2133_s7 + $0x7f0] sm:$0xff] }
 0x189   : > { %962 = vmatprep.mubr.f32.mxu1 %v2299_v10  ;;  %1075 = vmatprep.mubr.f32.mxu0 %v2299_v10  ;;  %v1532_v10 = vpack.c.bf16 %v572_v1, %v564_v63  ;;  %v1544_v59 = vpack.c.bf16 %v620_v49, %v612_v48  ;;  %v636_v63 = vld [vmem:[%s2133_s7 + $0x6e0] sm:$0xff] }
 0x18a   : > { %1527 = vmatprep.subr.bf16.mxu1 %v1526_v56  ;;  %1591 = vmatprep.subr.bf16.mxu0 %v1590_v0  ;;  %v629_v56 = vld [vmem:[%s2133_s7 + $0x6a8] sm:$0xff] }
 0x18b   : > { %v637_v0 = vld [vmem:[%s2133_s7 + $0x6e8] sm:$0xff] }
 0x18c   : > { %1529 = vmatpush1.bf16.msra.mxu1 %v1528_v61  ;;  %1593 = vmatpush1.bf16.msra.mxu0 %v1592_v62  ;;  %v1608_v61 = vpack.c.bf16 %v622_v55, %v614_v54  ;;  %v628_v62 = vld [vmem:[%s2133_s7 + $0x6a0] sm:$0xff]  ;;  %v1546_v1 = vpack.c.bf16 %v637_v0, %v629_v56 }
 0x18d   : > { %1531 = vmatprep.subr.bf16.mxu1 %v1530_v3  ;;  %1595 = vmatprep.subr.bf16.mxu0 %v1594_v4  ;;  %v1610_v3 = vpack.c.bf16 %v639_v58, %v631_v57  ;;  %v630_v4 = vld [vmem:[%s2133_s7 + $0x6b0] sm:$0xff]  ;;  %v1548_v12 = vpack.c.bf16 %v636_v63, %v628_v62 }
 0x190   : > { %1533 = vmatpush1.bf16.msra.mxu1 %v1532_v10  ;;  %1597 = vmatpush1.bf16.msra.mxu0 %v1596_v14  ;;  %v1612_v10 = vpack.c.bf16 %v638_v6, %v630_v4  ;;  %v644_v14 = vld [vmem:[%s2133_s7 + $0x720] sm:$0xff] }
 0x191   : > { %1535 = vmatprep.subr.bf16.mxu1 %v1534_v17  ;;  %1599 = vmatprep.subr.bf16.mxu0 %v1598_v20  ;;  %v1614_v17 = vpack.c.bf16 %v655_v11, %v647_v9  ;;  %v646_v20 = vld [vmem:[%s2133_s7 + $0x730] sm:$0xff]  ;;  %v1552_v27 = vpack.c.bf16 %v652_v15, %v644_v14 }
 0x194   : > { %1537 = vmatpush1.bf16.msra.mxu1 %v1536_v28  ;;  %1601 = vmatpush1.bf16.msra.mxu0 %v1600_v30  ;;  %v1616_v28 = vpack.c.bf16 %v654_v21, %v646_v20  ;;  %v660_v30 = vld [vmem:[%s2133_s7 + $0x7a0] sm:$0xff] }
 0x195   : > { %1539 = vmatprep.subr.bf16.mxu1 %v1538_v35  ;;  %1603 = vmatprep.subr.bf16.mxu0 %v1602_v36  ;;  %v668_v35 = vld [vmem:[%s2133_s7 + $0x7e0] sm:$0xff]  ;;  %v662_v36 = vld [vmem:[%s2133_s7 + $0x7b0] sm:$0xff] }
 0x196   : > { %v1556_v39 = vpack.c.bf16 %v668_v35, %v660_v30  ;;  %v1620_v40 = vpack.c.bf16 %v670_v37, %v662_v36 }
 0x198   : > { %1541 = vmatpush1.bf16.msra.mxu1 %v1540_v44  ;;  %1605 = vmatpush1.bf16.msra.mxu0 %v1604_v46 }
 0x199   : > { %1543 = vmatprep.subr.bf16.mxu1 %v1542_v50  ;;  %1607 = vmatprep.subr.bf16.mxu0 %v1606_v53 }
 0x19c   : > { %1545 = vmatpush1.bf16.msra.mxu1 %v1544_v59  ;;  %1609 = vmatpush1.bf16.msra.mxu0 %v1608_v61 }
 0x19d   : > { %1547 = vmatprep.subr.bf16.mxu1 %v1546_v1  ;;  %1611 = vmatprep.subr.bf16.mxu0 %v1610_v3 }
 0x1a0   : > { %1549 = vmatpush1.bf16.msra.mxu1 %v1548_v12  ;;  %1613 = vmatpush1.bf16.msra.mxu0 %v1612_v10 }
 0x1a1   : > { %1551 = vmatprep.subr.bf16.mxu1 %v1550_v16  ;;  %1615 = vmatprep.subr.bf16.mxu0 %v1614_v17 }
 0x1a4   : > { %1553 = vmatpush1.bf16.msra.mxu1 %v1552_v27  ;;  %1617 = vmatpush1.bf16.msra.mxu0 %v1616_v28 }
 0x1a5   : > { %1555 = vmatprep.subr.bf16.mxu1 %v1554_v31  ;;  %1619 = vmatprep.subr.bf16.mxu0 %v1618_v32 }
 0x1a8   : > { %1557 = vmatpush1.bf16.msra.mxu1 %v1556_v39  ;;  %1621 = vmatpush1.bf16.msra.mxu0 %v1620_v40 }
 0x1ab   : > { %963 = vmatmul.mubr.f32.vlgmr.msra.gmra.mrb[16].mxu1 %v2295_v5  ;;  %1076 = vmatmul.mubr.f32.vlgmr.msra.gmra.mrb[32].mxu0 %v2295_v5 }
 0x1ac   : > { %968 = vmatprep.mubr.f32.mxu1 %v2315_v24  ;;  %1081 = vmatprep.mubr.f32.mxu0 %v2315_v24 }
 0x1af   : > { %969 = vmatmul.mubr.f32.gmra.mrb[18].mxu1 %v2311_v19  ;;  %1082 = vmatmul.mubr.f32.gmra.mrb[34].mxu0 %v2311_v19 }
 0x1b0   : > { %974 = vmatprep.mubr.f32.mxu1 %v2331_v38  ;;  %1087 = vmatprep.mubr.f32.mxu0 %v2331_v38 }
 0x1b3   : > { %975 = vmatmul.mubr.f32.gmra.mrb[20].mxu1 %v2327_v33  ;;  %1088 = vmatmul.mubr.f32.gmra.mrb[36].mxu0 %v2327_v33 }
 0x1b4   : > { %980 = vmatprep.mubr.f32.mxu1 %v2347_v52  ;;  %1093 = vmatprep.mubr.f32.mxu0 %v2347_v52 }
 0x1b7   : > { %981 = vmatmul.mubr.f32.gmra.mrb[22].mxu1 %v2343_v47  ;;  %1094 = vmatmul.mubr.f32.gmra.mrb[38].mxu0 %v2343_v47 }
 0x1b8   : > { %986 = vmatprep.mubr.f32.mxu1 %v2363_v2  ;;  %1099 = vmatprep.mubr.f32.mxu0 %v2363_v2 }
 0x1bb   : > { %987 = vmatmul.mubr.f32.gmra.mrb[24].mxu1 %v2359_v60  ;;  %1100 = vmatmul.mubr.f32.gmra.mrb[40].mxu0 %v2359_v60 }
 0x1bc   : > { %992 = vmatprep.mubr.f32.mxu1 %v2379_v18  ;;  %1105 = vmatprep.mubr.f32.mxu0 %v2379_v18 }
 0x1bf   : > { %993 = vmatmul.mubr.f32.gmra.mrb[26].mxu1 %v2375_v13  ;;  %1106 = vmatmul.mubr.f32.gmra.mrb[42].mxu0 %v2375_v13 }
 0x1c0   : > { %998 = vmatprep.mubr.f32.mxu1 %v2394_v34  ;;  %1111 = vmatprep.mubr.f32.mxu0 %v2394_v34 }
 0x1c3   : > { %999 = vmatmul.mubr.f32.gmra.mrb[28].mxu1 %v2391_v29  ;;  %1112 = vmatmul.mubr.f32.gmra.mrb[44].mxu0 %v2391_v29 }
 0x1c4   : > { %1004 = vmatprep.mubr.f32.mxu1 %v2411_v51  ;;  %1117 = vmatprep.mubr.f32.mxu0 %v2411_v51 }
 0x1c7   : > { %1005 = vmatmul.mubr.f32.gmra.mrb[30].mxu1 %v2407_v45  ;;  %1118 = vmatmul.mubr.f32.gmra.mrb[46].mxu0 %v2407_v45 }
 0x23e   : > { %v738_v5 = vpop.f32.mrb[0].mxu1  ;;  %v851_v19 = vpop.f32.mrb[16].mxu0 }
 0x23f   : > { %1124 = vst [vmem:[%s2508_s22] sm:$0xff] %v738_v5  ;;  %1126 = vst [vmem:[%s2508_s22 + $0x10] sm:$0xff] %v851_v19  ;;  %v740_v24 = vpop.f32.mrb[1].mxu1  ;;  %v853_v33 = vpop.f32.mrb[17].mxu0 }
 0x240   : > { %1125 = vst [vmem:[%s2508_s22 + $0x8] sm:$0xff] %v740_v24  ;;  %1127 = vst [vmem:[%s2508_s22 + $0x18] sm:$0xff] %v853_v33 }
 0x242   : > { %v744_v38 = vpop.f32.mrb[2].mxu1  ;;  %v857_v47 = vpop.f32.mrb[18].mxu0 }
 0x243   : > { %1132 = vst [vmem:[%s2508_s22 + $0x40] sm:$0xff] %v744_v38  ;;  %1134 = vst [vmem:[%s2508_s22 + $0x50] sm:$0xff] %v857_v47  ;;  %v746_v52 = vpop.f32.mrb[3].mxu1  ;;  %v859_v60 = vpop.f32.mrb[19].mxu0 }
 0x244   : > { %1133 = vst [vmem:[%s2508_s22 + $0x48] sm:$0xff] %v746_v52  ;;  %1135 = vst [vmem:[%s2508_s22 + $0x58] sm:$0xff] %v859_v60 }
 0x246   : > { %v750_v2 = vpop.f32.mrb[4].mxu1  ;;  %v863_v13 = vpop.f32.mrb[20].mxu0 }
 0x247   : > { %1140 = vst [vmem:[%s2508_s22 + $0x80] sm:$0xff] %v750_v2  ;;  %1142 = vst [vmem:[%s2508_s22 + $0x90] sm:$0xff] %v863_v13  ;;  %v752_v18 = vpop.f32.mrb[5].mxu1  ;;  %v865_v29 = vpop.f32.mrb[21].mxu0 }
 0x248   : > { %1141 = vst [vmem:[%s2508_s22 + $0x88] sm:$0xff] %v752_v18  ;;  %1143 = vst [vmem:[%s2508_s22 + $0x98] sm:$0xff] %v865_v29 }
 0x24a   : > { %v756_v34 = vpop.f32.mrb[6].mxu1  ;;  %v869_v45 = vpop.f32.mrb[22].mxu0 }
 0x24b   : > { %1148 = vst [vmem:[%s2508_s22 + $0xc0] sm:$0xff] %v756_v34  ;;  %1150 = vst [vmem:[%s2508_s22 + $0xd0] sm:$0xff] %v869_v45  ;;  %v758_v51 = vpop.f32.mrb[7].mxu1  ;;  %v871_v41 = vpop.f32.mrb[23].mxu0 }
 0x24c   : > { %1149 = vst [vmem:[%s2508_s22 + $0xc8] sm:$0xff] %v758_v51  ;;  %1151 = vst [vmem:[%s2508_s22 + $0xd8] sm:$0xff] %v871_v41 }
 0x24e   : > { %v762_v42 = vpop.f32.mrb[8].mxu1  ;;  %v875_v43 = vpop.f32.mrb[24].mxu0 }
 0x24f   : > { %1156 = vst [vmem:[%s2508_s22 + $0x100] sm:$0xff] %v762_v42  ;;  %1158 = vst [vmem:[%s2508_s22 + $0x110] sm:$0xff] %v875_v43  ;;  %v764_v44 = vpop.f32.mrb[9].mxu1  ;;  %v877_v46 = vpop.f32.mrb[25].mxu0 }
 0x250   : > { %1157 = vst [vmem:[%s2508_s22 + $0x108] sm:$0xff] %v764_v44  ;;  %1159 = vst [vmem:[%s2508_s22 + $0x118] sm:$0xff] %v877_v46 }
 0x252   : > { %v768_v48 = vpop.f32.mrb[10].mxu1  ;;  %v881_v49 = vpop.f32.mrb[26].mxu0 }
 0x253   : > { %1164 = vst [vmem:[%s2508_s22 + $0x140] sm:$0xff] %v768_v48  ;;  %1166 = vst [vmem:[%s2508_s22 + $0x150] sm:$0xff] %v881_v49  ;;  %v770_v50 = vpop.f32.mrb[11].mxu1  ;;  %v883_v53 = vpop.f32.mrb[27].mxu0 }
 0x254   : > { %1165 = vst [vmem:[%s2508_s22 + $0x148] sm:$0xff] %v770_v50  ;;  %1167 = vst [vmem:[%s2508_s22 + $0x158] sm:$0xff] %v883_v53 }
 0x256   : > { %v774_v54 = vpop.f32.mrb[12].mxu1  ;;  %v887_v55 = vpop.f32.mrb[28].mxu0 }
 0x257   : > { %1172 = vst [vmem:[%s2508_s22 + $0x180] sm:$0xff] %v774_v54  ;;  %1174 = vst [vmem:[%s2508_s22 + $0x190] sm:$0xff] %v887_v55  ;;  %v776_v56 = vpop.f32.mrb[13].mxu1  ;;  %v889_v0 = vpop.f32.mrb[29].mxu0 }
 0x258   : > { %1173 = vst [vmem:[%s2508_s22 + $0x188] sm:$0xff] %v776_v56  ;;  %1175 = vst [vmem:[%s2508_s22 + $0x198] sm:$0xff] %v889_v0 }
 0x25a   : > { %v780_v57 = vpop.f32.mrb[14].mxu1  ;;  %v893_v58 = vpop.f32.mrb[30].mxu0 }
 0x25b   : > { %1180 = vst [vmem:[%s2508_s22 + $0x1c0] sm:$0xff] %v780_v57  ;;  %1182 = vst [vmem:[%s2508_s22 + $0x1d0] sm:$0xff] %v893_v58  ;;  %v782_v59 = vpop.f32.mrb[15].mxu1  ;;  %v895_v61 = vpop.f32.mrb[31].mxu0 }
 0x25c   : > { %1181 = vst [vmem:[%s2508_s22 + $0x1c8] sm:$0xff] %v782_v59  ;;  %1183 = vst [vmem:[%s2508_s22 + $0x1d8] sm:$0xff] %v895_v61 }
 0x27e   : > { %v964_v62 = vpop.f32.mrb[16].mxu1  ;;  %v1077_v63 = vpop.f32.mrb[32].mxu0 }
 0x27f   : > { %1128 = vst [vmem:[%s2508_s22 + $0x20] sm:$0xff] %v964_v62  ;;  %1130 = vst [vmem:[%s2508_s22 + $0x30] sm:$0xff] %v1077_v63  ;;  %v966_v1 = vpop.f32.mrb[17].mxu1  ;;  %v1079_v3 = vpop.f32.mrb[33].mxu0 }
 0x280   : > { %1129 = vst [vmem:[%s2508_s22 + $0x28] sm:$0xff] %v966_v1  ;;  %1131 = vst [vmem:[%s2508_s22 + $0x38] sm:$0xff] %v1079_v3 }
 0x282   : > { %v970_v4 = vpop.f32.mrb[18].mxu1  ;;  %v1083_v6 = vpop.f32.mrb[34].mxu0 }
 0x283   : > { %1136 = vst [vmem:[%s2508_s22 + $0x60] sm:$0xff] %v970_v4  ;;  %1138 = vst [vmem:[%s2508_s22 + $0x70] sm:$0xff] %v1083_v6  ;;  %v972_v7 = vpop.f32.mrb[19].mxu1  ;;  %v1085_v8 = vpop.f32.mrb[35].mxu0 }
 0x284   : > { %1137 = vst [vmem:[%s2508_s22 + $0x68] sm:$0xff] %v972_v7  ;;  %1139 = vst [vmem:[%s2508_s22 + $0x78] sm:$0xff] %v1085_v8 }
 0x286   : > { %v976_v9 = vpop.f32.mrb[20].mxu1  ;;  %v1089_v11 = vpop.f32.mrb[36].mxu0 }
 0x287   : > { %1144 = vst [vmem:[%s2508_s22 + $0xa0] sm:$0xff] %v976_v9  ;;  %1146 = vst [vmem:[%s2508_s22 + $0xb0] sm:$0xff] %v1089_v11  ;;  %v978_v12 = vpop.f32.mrb[21].mxu1  ;;  %v1091_v10 = vpop.f32.mrb[37].mxu0 }
 0x288   : > { %1145 = vst [vmem:[%s2508_s22 + $0xa8] sm:$0xff] %v978_v12  ;;  %1147 = vst [vmem:[%s2508_s22 + $0xb8] sm:$0xff] %v1091_v10 }
 0x28a   : > { %v982_v14 = vpop.f32.mrb[22].mxu1  ;;  %v1095_v15 = vpop.f32.mrb[38].mxu0 }
 0x28b   : > { %1152 = vst [vmem:[%s2508_s22 + $0xe0] sm:$0xff] %v982_v14  ;;  %1154 = vst [vmem:[%s2508_s22 + $0xf0] sm:$0xff] %v1095_v15  ;;  %v984_v16 = vpop.f32.mrb[23].mxu1  ;;  %v1097_v17 = vpop.f32.mrb[39].mxu0 }
 0x28c   : > { %1153 = vst [vmem:[%s2508_s22 + $0xe8] sm:$0xff] %v984_v16  ;;  %1155 = vst [vmem:[%s2508_s22 + $0xf8] sm:$0xff] %v1097_v17 }
 0x28e   : > { %v988_v20 = vpop.f32.mrb[24].mxu1  ;;  %v1101_v21 = vpop.f32.mrb[40].mxu0 }
 0x28f   : > { %1160 = vst [vmem:[%s2508_s22 + $0x120] sm:$0xff] %v988_v20  ;;  %1162 = vst [vmem:[%s2508_s22 + $0x130] sm:$0xff] %v1101_v21  ;;  %v990_v22 = vpop.f32.mrb[25].mxu1  ;;  %v1103_v23 = vpop.f32.mrb[41].mxu0 }
 0x290   : > { %1161 = vst [vmem:[%s2508_s22 + $0x128] sm:$0xff] %v990_v22  ;;  %1163 = vst [vmem:[%s2508_s22 + $0x138] sm:$0xff] %v1103_v23 }
 0x292   : > { %v994_v25 = vpop.f32.mrb[26].mxu1  ;;  %v1107_v26 = vpop.f32.mrb[42].mxu0 }
 0x293   : > { %1168 = vst [vmem:[%s2508_s22 + $0x160] sm:$0xff] %v994_v25  ;;  %1170 = vst [vmem:[%s2508_s22 + $0x170] sm:$0xff] %v1107_v26  ;;  %v996_v27 = vpop.f32.mrb[27].mxu1  ;;  %v1109_v28 = vpop.f32.mrb[43].mxu0 }
 0x294   : > { %1169 = vst [vmem:[%s2508_s22 + $0x168] sm:$0xff] %v996_v27  ;;  %1171 = vst [vmem:[%s2508_s22 + $0x178] sm:$0xff] %v1109_v28 }
 0x296   : > { %v1000_v30 = vpop.f32.mrb[28].mxu1  ;;  %v1113_v31 = vpop.f32.mrb[44].mxu0 }
 0x297   : > { %1176 = vst [vmem:[%s2508_s22 + $0x1a0] sm:$0xff] %v1000_v30  ;;  %1178 = vst [vmem:[%s2508_s22 + $0x1b0] sm:$0xff] %v1113_v31  ;;  %v1002_v32 = vpop.f32.mrb[29].mxu1  ;;  %v1115_v35 = vpop.f32.mrb[45].mxu0 }
 0x298   : > { %1177 = vst [vmem:[%s2508_s22 + $0x1a8] sm:$0xff] %v1002_v32  ;;  %1179 = vst [vmem:[%s2508_s22 + $0x1b8] sm:$0xff] %v1115_v35 }
 0x29a   : > { %v1006_v36 = vpop.f32.mrb[30].mxu1  ;;  %v1119_v37 = vpop.f32.mrb[46].mxu0 }
 0x29b   : > { %1184 = vst [vmem:[%s2508_s22 + $0x1e0] sm:$0xff] %v1006_v36  ;;  %1186 = vst [vmem:[%s2508_s22 + $0x1f0] sm:$0xff] %v1119_v37  ;;  %v1008_v39 = vpop.f32.mrb[31].mxu1  ;;  %v1121_v40 = vpop.f32.mrb[47].mxu0 }
 0x29c   : > { %1185 = vst [vmem:[%s2508_s22 + $0x1e8] sm:$0xff] %v1008_v39  ;;  %1187 = vst [vmem:[%s2508_s22 + $0x1f8] sm:$0xff] %v1121_v40 }
 0x29d   : > { %1815 = shalt.err (!%p1812_p4)
}
 0x29e   : > { %s1816_s19 = scalar_lea.hbm %s2575_s9, 8192  ;;  %s1820_s30 = scalar_lea.hbm %s2633_s3, 16384 }
 0x29f   : > { %p1817_p8 = scmp.ne.s32.totalorder %s2575_s9, %s1816_s19  ;;  %p1821_p5 = scmp.lt.u32.totalorder %s2575_s9, %s2633_s3 }
 0x2a0   : > { %p1822_p1 = scmp.lt.u32.totalorder %s1820_s30, %s1816_s19  ;;  %p1824_p6 = scmp.lt.u32.totalorder %s1816_s19, %s2575_s9 }
 0x2a1   : > { %p1818_p12 = pnand %p1817_p8, %p2653_p11 }
 0x2a2   : > { %p1823_p7 = por %p1822_p1, %p1821_p5 }
 0x2a3   : > { %p1819_p13 = pneg %p1818_p12 }
 0x2a4   : > { %p1825_p10 = por %p1824_p6, %p1823_p7 }
 0x2a6   : > { %p1826_p2 = pnand %p1825_p10, %p1819_p13 }
 0x2a8   : > { %1829 = shalt.err (!%p1826_p2)
}
 0x2a9   : > { %s1906_s22 = smov 1024   ;;  %s1907_s21 = smov 2048  }
 0x2aa   : > { %s1908_s29 = smov 64  }
 0x2ab   : > { %1632 = dma.vmem_to_hbm [thread:$0]  (%p2653_p11), %s2577_s26, 8192, %s2575_s9, %s1189_s15, %s1906_s22, %s1907_s21, %s1908_s29  }
 0x2ac PF: > { %s1219_s20 = sand.u32 1, %s1872_s12   ;;  %p2654_p3 = scmp.ne.s32.totalorder %s2642_s24, 0 }
 0x2ad   : > { %p2655_p9 = scmp.ge.s32.totalorder %s1892_s17, 2  ;;  %s1220_s28 = scalar_lea.sflag [#allocation4], %s1219_s20 }
 0x2af   : > { %p1646_p0 = pnand %p2655_p9, %p2654_p3 }
 0x2b1   : > { %1867 = dma.done.wait (!%p1646_p0), %s1220_s28, 8192  }
 0x2b2   : > { %1869 = vsyncadd (!%p1646_p0), %s1220_s28, 4294959104  ;;  %s18_s17 = sadd.s32 1, %s1892_s17   ;;  %s2656_s12 = smov %s1876_s13 }
 0x2b3   : > { %p15_p4 = scmp.ge.s32.totalorder %s18_s17, 4   ;;  %s2657_s13 = smov %s1880_s14 }
 0x2b4   : > { %s2658_s14 = smov %s2088_s6  ;;  %s2659_s15 = smov %s1888_s16 }
 0x2b5   : > { %s2660_s16 = smov %s2662_s10  ;;  %17 = sbr.rel (!%p15_p4) target bundleno = 6 (0x6), region = 85 }
 0x2bc   :  { %1225 = vsyncpa [#allocation3], 1 }
 0x2bd   :  { %1227 = vsyncpa [#allocation3 + $0x1], 1 }
 0x2be   :  { %1228 = vsyncpa [#allocation6], 1 }
 0x2bf   :  { %1229 = vsyncpa [#allocation4], 1 }
 0x2c0   :  { %1231 = vsyncpa [#allocation4 + $0x1], 1 }

</bundles_post_ra>
